<compile_context>
chip_gen: v7x
topology: tpu7x:2x2x1
jax: 0.10.0
libtpu: 0.0.40
codegen_flags: <defaults>
</compile_context>

<pallas_src>
import functools

import jax
import jax.numpy as jnp
from jax.experimental import pallas as pl
from jax.experimental.pallas import tpu as pltpu

ACTION_DIM = 6
H_DIM = 12
INFO_DIM = 50 + 12      # 62
TEST_DIM = 50 + 6       # 56
TESTH_DIM = 6
Z_DIM = 6

INFO_PAD = 64           # 62 (+1 ones/bias column) -> 64
TEST_PAD = 64           # 56 (+1 ones/bias column) -> 64
ACTION_PAD = 128        # lane-dense output head / softmax / pp store
NEG_BIG = -1e30         # padded-logit bias -> exp underflows to exactly 0.0


def _dot(a, b):
    return jnp.dot(a, b, preferred_element_type=jnp.float32)


def vae_kernel(num,
               ctx_ref, tst_ref, eps_ref,
               wih_e_ref, whh_e_ref,
               whz_ref, bhz_ref,
               wih_d_ref, whh_d_ref,
               whx_ref, bhx_ref,
               pp_ref, zmu_ref, zvar_ref, z_ref,
               xe_ref, xd_ref, hdec_ref):
    """Fused-gate VAE forward.

    Host-packed weight layout:
      * gate order (i, f, o, g); g-gate columns pre-scaled by 2 so that
        tanh(x) == 2*sigmoid(2x) - 1  -> one sigmoid per step covers all gates.
      * input biases folded into wih (ones column appended to ctx/tst).
      * latent heads merged: whz = [whz_mu | whz_var], bhz likewise.
      * output head padded to 128 lanes; padded bias = -1e30 so the full-row
        softmax equals the softmax over the first ACTION_DIM columns.
    """
    unroll = max(1, min(int(num), 8))

    # ---------------- encoder ----------------
    # Hoisted input-to-hidden matmul (bias already folded in): one MXU call
    # covers all timesteps; only the tiny [1,H]@[H,4H] matmul stays serial.
    xe_ref[...] = _dot(ctx_ref[...], wih_e_ref[...])
    whh_e = whh_e_ref[...]

    def enc_body(i, carry):
        h, c = carry
        pre = xe_ref[pl.ds(i, 1), :] + _dot(h, whh_e)            # [1, 4H]
        sig = jax.nn.sigmoid(pre)                                 # i | f | o | g(2x)
        g_i = sig[:, :H_DIM]
        g_f = sig[:, H_DIM:2 * H_DIM]
        g_o = sig[:, 2 * H_DIM:3 * H_DIM]
        g_g = 2.0 * sig[:, 3 * H_DIM:] - 1.0                      # == tanh(pre_g)
        c_new = g_f * c + g_i * g_g
        h_new = g_o * jnp.tanh(c_new)
        return h_new, c_new

    h0 = jnp.zeros((1, H_DIM), jnp.float32)
    c0 = jnp.zeros((1, H_DIM), jnp.float32)
    h_t, _ = jax.lax.fori_loop(0, num, enc_body, (h0, c0), unroll=unroll)

    # ---------------- latent head (merged mu|var) + reparameterization -------
    zmv = _dot(h_t, whz_ref[...]) + bhz_ref[...]                  # [1, 2*Z_DIM]
    z_mu = zmv[:, :Z_DIM]
    z_var = zmv[:, Z_DIM:]
    z = z_mu + jnp.exp(z_var * 0.5) * eps_ref[...]
    zmu_ref[...] = z_mu
    zvar_ref[...] = z_var
    z_ref[...] = z

    # ---------------- decoder ----------------
    xd_ref[...] = _dot(tst_ref[...], wih_d_ref[...])
    whh_d = whh_d_ref[...]

    def dec_body(i, carry):
        h, c = carry
        pre = xd_ref[pl.ds(i, 1), :] + _dot(h, whh_d)             # [1, 4*TESTH]
        sig = jax.nn.sigmoid(pre)
        g_i = sig[:, :TESTH_DIM]
        g_f = sig[:, TESTH_DIM:2 * TESTH_DIM]
        g_o = sig[:, 2 * TESTH_DIM:3 * TESTH_DIM]
        g_g = 2.0 * sig[:, 3 * TESTH_DIM:] - 1.0
        c_new = g_f * c + g_i * g_g
        h_new = g_o * jnp.tanh(c_new)
        hdec_ref[pl.ds(i, 1), :] = h_new                          # single VMEM store
        return h_new, c_new

    h2 = jnp.tanh(z)
    c2 = jnp.zeros((1, TESTH_DIM), jnp.float32)
    jax.lax.fori_loop(0, num, dec_body, (h2, c2), unroll=unroll)

    # Output head + softmax, batched over all timesteps, lane-dense (128 wide).
    logits = _dot(hdec_ref[...], whx_ref[...]) + bhx_ref[...]     # [num, 128]
    m = jnp.max(logits, axis=-1, keepdims=True)
    e = jnp.exp(logits - m)                                        # padded cols -> 0
    pp_ref[...] = e / jnp.sum(e, axis=-1, keepdims=True)          # exact divide


# ---------------- host-side weight packing (fuse + scale + fold + pad) -------
def _fuse_gates(stack):
    # PyTorch-style per-gate stack (i, f, g, o) -> fused (i, f, o, 2*g).
    return jnp.concatenate(
        [stack[0], stack[1], stack[3], 2.0 * stack[2]], axis=-1).astype(jnp.float32)


def pack_params(p):
    def in_slab(wih_stack, b_stack, in_dim, pad_dim):
        w = _fuse_gates(wih_stack)                     # [in_dim, 4H]
        b = _fuse_gates(b_stack)[0]                    # [4H]
        slab = jnp.zeros((pad_dim, w.shape[-1]), jnp.float32)
        slab = slab.at[:in_dim, :].set(w)
        slab = slab.at[in_dim, :].set(b)               # bias row, hit by ones column
        return slab

    whx = jnp.zeros((TESTH_DIM, ACTION_PAD), jnp.float32)
    whx = whx.at[:, :ACTION_DIM].set(p["whx"])
    bhx = jnp.full((1, ACTION_PAD), NEG_BIG, jnp.float32)
    bhx = bhx.at[:, :ACTION_DIM].set(p["bhx"])

    return dict(
        wih_e=in_slab(p["wih_e"], p["b_e"], INFO_DIM, INFO_PAD),    # [64, 48]
        whh_e=_fuse_gates(p["whh_e"]),                               # [12, 48]
        whz=jnp.concatenate([p["whz_mu"], p["whz_var"]], axis=-1),   # [12, 12]
        bhz=jnp.concatenate([p["bhz_mu"], p["bhz_var"]], axis=-1),   # [1, 12]
        wih_d=in_slab(p["wih_d"], p["b_d"], TEST_DIM, TEST_PAD),     # [64, 24]
        whh_d=_fuse_gates(p["whh_d"]),                               # [6, 24]
        whx=whx, bhx=bhx,
    )


def _augment(x, in_dim, pad_dim):
    out = jnp.zeros((x.shape[0], pad_dim), jnp.float32)
    out = out.at[:, :in_dim].set(x)
    out = out.at[:, in_dim].set(1.0)                   # ones column -> bias row
    return out


def vae_forward(context, test, eps, params):
    num = context.shape[0]
    fp = pack_params(params)
    ctx = _augment(context, INFO_DIM, INFO_PAD)
    tst = _augment(test, TEST_DIM, TEST_PAD)

    inputs = (
        ctx, tst, eps,
        fp["wih_e"], fp["whh_e"],
        fp["whz"], fp["bhz"],
        fp["wih_d"], fp["whh_d"],
        fp["whx"], fp["bhx"],
    )
    vmem = pl.BlockSpec(memory_space=pltpu.MemorySpace.VMEM)
    out_shape = (
        jax.ShapeDtypeStruct((num, ACTION_PAD), jnp.float32),    # pp (lane-dense)
        jax.ShapeDtypeStruct((1, Z_DIM), jnp.float32),           # z_mu
        jax.ShapeDtypeStruct((1, Z_DIM), jnp.float32),           # z_var
        jax.ShapeDtypeStruct((1, Z_DIM), jnp.float32),           # z
    )
    pp_pad, z_mu, z_var, z = pl.pallas_call(
        functools.partial(vae_kernel, num),
        out_shape=out_shape,
        in_specs=[vmem] * len(inputs),
        out_specs=tuple([vmem] * 4),
        scratch_shapes=[
            pltpu.VMEM((num, 4 * H_DIM), jnp.float32),      # hoisted encoder X@Wih
            pltpu.VMEM((num, 4 * TESTH_DIM), jnp.float32),  # hoisted decoder X@Wih
            pltpu.VMEM((num, TESTH_DIM), jnp.float32),      # decoder hidden states
        ],
    )(*inputs)
    return pp_pad[:, :ACTION_DIM], z_mu, z_var, z


# ---------------- parameter init (deterministic, xavier-like) ----------------
def init_params(key):
    ks = jax.random.split(key, 16)

    def rnd(k, shape, fan):
        return (jax.random.normal(k, shape) / jnp.sqrt(fan / 2.0)).astype(jnp.float32)

    return dict(
        # encoder LSTMCell(INFO_DIM, H_DIM): stacked per-gate (i, f, g, o)
        wih_e=rnd(ks[0], (4, INFO_DIM, H_DIM), INFO_DIM),
        whh_e=rnd(ks[1], (4, H_DIM, H_DIM), H_DIM),
        b_e=rnd(ks[2], (4, 1, H_DIM), H_DIM),       # b_ih + b_hh combined
        whz_mu=rnd(ks[3], (H_DIM, Z_DIM), H_DIM),
        bhz_mu=jnp.zeros((1, Z_DIM), jnp.float32),
        whz_var=rnd(ks[4], (H_DIM, Z_DIM), H_DIM),
        bhz_var=jnp.zeros((1, Z_DIM), jnp.float32),
        # decoder LSTMCell(TEST_DIM, TESTH_DIM)
        wih_d=rnd(ks[5], (4, TEST_DIM, TESTH_DIM), TEST_DIM),
        whh_d=rnd(ks[6], (4, TESTH_DIM, TESTH_DIM), TESTH_DIM),
        b_d=rnd(ks[7], (4, 1, TESTH_DIM), TESTH_DIM),
        whx=rnd(ks[8], (TESTH_DIM, ACTION_DIM), TESTH_DIM),
        bhx=jnp.zeros((1, ACTION_DIM), jnp.float32),
    )


# ---------------- pure-JAX reference (mirrors the PyTorch forward) -----------
def vae_reference(context, test, eps, p):
    num = context.shape[0]

    def cell(x, h, c, wi, wh, bb):
        g_i = jax.nn.sigmoid(x @ wi[0] + h @ wh[0] + bb[0])
        g_f = jax.nn.sigmoid(x @ wi[1] + h @ wh[1] + bb[1])
        g_g = jnp.tanh(x @ wi[2] + h @ wh[2] + bb[2])
        g_o = jax.nn.sigmoid(x @ wi[3] + h @ wh[3] + bb[3])
        c_new = g_f * c + g_i * g_g
        return g_o * jnp.tanh(c_new), c_new

    h = jnp.zeros((1, H_DIM), jnp.float32)
    c = jnp.zeros((1, H_DIM), jnp.float32)
    for i in range(num):
        h, c = cell(context[i:i + 1], h, c, p["wih_e"], p["whh_e"], p["b_e"])
    z_mu = h @ p["whz_mu"] + p["bhz_mu"]
    z_var = h @ p["whz_var"] + p["bhz_var"]
    z = z_mu + jnp.exp(z_var / 2.0) * eps

    h2 = jnp.tanh(z)
    c2 = jnp.zeros((1, TESTH_DIM), jnp.float32)
    outs = []
    for i in range(num):
        h2, c2 = cell(test[i:i + 1], h2, c2, p["wih_d"], p["whh_d"], p["b_d"])
        outs.append(jax.nn.softmax(h2 @ p["whx"] + p["bhx"], axis=-1))
    pp = jnp.concatenate(outs, axis=0)
    return pp, z_mu, z_var, z


if __name__ == "__main__":
    key = jax.random.PRNGKey(0)
    k_ctx, k_test, k_eps, k_params = jax.random.split(key, 4)

    num = 8
    context = jax.random.normal(k_ctx, (num, INFO_DIM), dtype=jnp.float32)
    test = jax.random.normal(k_test, (num, TEST_DIM), dtype=jnp.float32)
    eps = jax.random.normal(k_eps, (1, Z_DIM), dtype=jnp.float32)
    params = init_params(k_params)

    pp, z_mu, z_var, z = jax.block_until_ready(
        vae_forward(context, test, eps, params))

    pp_r, zmu_r, zvar_r, z_r = vae_reference(context, test, eps, params)
    assert pp.shape == (num, ACTION_DIM)
    assert z_mu.shape == (1, Z_DIM) and z_var.shape == (1, Z_DIM) and z.shape == (1, Z_DIM)
    assert jnp.allclose(pp, pp_r, atol=1e-5, rtol=1e-5)
    assert jnp.allclose(z_mu, zmu_r, atol=1e-5, rtol=1e-5)
    assert jnp.allclose(z_var, zvar_r, atol=1e-5, rtol=1e-5)
    assert jnp.allclose(z, z_r, atol=1e-5, rtol=1e-5)

    print("KERNEL_OK")
</pallas_src>

<mosaic_0001>
module attributes {stable_mosaic.version = 11 : i64} {
  func.func @vae_kernel(%arg0: memref<8x64xf32, #tpu.memory_space<vmem>>, %arg1: memref<8x64xf32, #tpu.memory_space<vmem>>, %arg2: memref<1x6xf32, #tpu.memory_space<vmem>>, %arg3: memref<64x48xf32, #tpu.memory_space<vmem>>, %arg4: memref<12x48xf32, #tpu.memory_space<vmem>>, %arg5: memref<12x12xf32, #tpu.memory_space<vmem>>, %arg6: memref<1x12xf32, #tpu.memory_space<vmem>>, %arg7: memref<64x24xf32, #tpu.memory_space<vmem>>, %arg8: memref<6x24xf32, #tpu.memory_space<vmem>>, %arg9: memref<6x128xf32, #tpu.memory_space<vmem>>, %arg10: memref<1x128xf32, #tpu.memory_space<vmem>>, %arg11: memref<8x128xf32, #tpu.memory_space<vmem>>, %arg12: memref<1x6xf32, #tpu.memory_space<vmem>>, %arg13: memref<1x6xf32, #tpu.memory_space<vmem>>, %arg14: memref<1x6xf32, #tpu.memory_space<vmem>>, %arg15: memref<8x48xf32, #tpu.memory_space<vmem>>, %arg16: memref<8x24xf32, #tpu.memory_space<vmem>>, %arg17: memref<8x6xf32, #tpu.memory_space<vmem>>) attributes {dimension_semantics = [], scalar_prefetch = 0 : i64, scratch_operands = 3 : i64, tpu.core_type = #tpu.core_type<tc>} {
    %c0 = arith.constant 0 : index
    %c0_0 = arith.constant 0 : index
    %0 = vector.load %arg0[%c0, %c0_0] : memref<8x64xf32, #tpu.memory_space<vmem>>, vector<8x64xf32>
    %c0_1 = arith.constant 0 : index
    %c0_2 = arith.constant 0 : index
    %1 = vector.load %arg3[%c0_1, %c0_2] : memref<64x48xf32, #tpu.memory_space<vmem>>, vector<64x48xf32>
    %cst = arith.constant dense<0.000000e+00> : vector<8x48xf32>
    %2 = tpu.matmul %0, %1, %cst {dimension_numbers = #tpu.dot_dimension_numbers<[1], [0], [0], [1], [0, 0, 1, 1], [], []>} : vector<8x64xf32>, vector<64x48xf32>, vector<8x48xf32> -> vector<8x48xf32>
    %c0_3 = arith.constant 0 : index
    %c0_4 = arith.constant 0 : index
    %3 = vector.load %arg15[%c0_3, %c0_4] : memref<8x48xf32, #tpu.memory_space<vmem>>, vector<8x48xf32>
    tpu.vector_store %arg15[%c0_3, %c0_4], %2 {strides = array<i32>} : memref<8x48xf32, #tpu.memory_space<vmem>>, vector<8x48xf32>,
    %c0_5 = arith.constant 0 : index
    %c0_6 = arith.constant 0 : index
    %4 = vector.load %arg4[%c0_5, %c0_6] : memref<12x48xf32, #tpu.memory_space<vmem>>, vector<12x48xf32>
    %cst_7 = arith.constant 0.000000e+00 : f32
    %5 = vector.broadcast %cst_7 : f32 to vector<1x12xf32>
    %cst_8 = arith.constant 0.000000e+00 : f32
    %6 = vector.broadcast %cst_8 : f32 to vector<1x12xf32>
    %c0_i32 = arith.constant 0 : i32
    %7 = arith.index_cast %c0_i32 : i32 to index
    %c0_9 = arith.constant 0 : index
    %8 = vector.load %arg15[%7, %c0_9] : memref<8x48xf32, #tpu.memory_space<vmem>>, vector<1x48xf32>
    %cst_10 = arith.constant dense<0.000000e+00> : vector<1x48xf32>
    %9 = tpu.matmul %5, %4, %cst_10 {dimension_numbers = #tpu.dot_dimension_numbers<[1], [0], [0], [1], [0, 0, 1, 1], [], []>} : vector<1x12xf32>, vector<12x48xf32>, vector<1x48xf32> -> vector<1x48xf32>
    %10 = arith.addf %8, %9 : vector<1x48xf32>
    %11 = arith.negf %10 : vector<1x48xf32>
    %12 = math.exp %11 : vector<1x48xf32>
    %cst_11 = arith.constant 1.000000e+00 : f32
    %13 = vector.broadcast %cst_11 : f32 to vector<1x48xf32>
    %14 = arith.addf %13, %12 : vector<1x48xf32>
    %15 = arith.divf %13, %14 : vector<1x48xf32>
    %16 = vector.extract_strided_slice %15 {offsets = [0, 0], sizes = [1, 12], strides = [1, 1]} : vector<1x48xf32> to vector<1x12xf32>
    %17 = vector.extract_strided_slice %15 {offsets = [0, 12], sizes = [1, 12], strides = [1, 1]} : vector<1x48xf32> to vector<1x12xf32>
    %18 = vector.extract_strided_slice %15 {offsets = [0, 24], sizes = [1, 12], strides = [1, 1]} : vector<1x48xf32> to vector<1x12xf32>
    %19 = vector.extract_strided_slice %15 {offsets = [0, 36], sizes = [1, 12], strides = [1, 1]} : vector<1x48xf32> to vector<1x12xf32>
    %cst_12 = arith.constant 2.000000e+00 : f32
    %20 = vector.broadcast %cst_12 : f32 to vector<1x12xf32>
    %21 = arith.mulf %20, %19 : vector<1x12xf32>
    %cst_13 = arith.constant 1.000000e+00 : f32
    %22 = vector.broadcast %cst_13 : f32 to vector<1x12xf32>
    %23 = arith.subf %21, %22 : vector<1x12xf32>
    %24 = arith.mulf %17, %6 : vector<1x12xf32>
    %25 = arith.mulf %16, %23 : vector<1x12xf32>
    %26 = arith.addf %24, %25 : vector<1x12xf32>
    %27 = math.tanh %26 : vector<1x12xf32>
    %28 = arith.mulf %18, %27 : vector<1x12xf32>
    %c1_i32 = arith.constant 1 : i32
    %29 = arith.index_cast %c1_i32 : i32 to index
    %c0_14 = arith.constant 0 : index
    %30 = vector.load %arg15[%29, %c0_14] : memref<8x48xf32, #tpu.memory_space<vmem>>, vector<1x48xf32>
    %cst_15 = arith.constant dense<0.000000e+00> : vector<1x48xf32>
    %31 = tpu.matmul %28, %4, %cst_15 {dimension_numbers = #tpu.dot_dimension_numbers<[1], [0], [0], [1], [0, 0, 1, 1], [], []>} : vector<1x12xf32>, vector<12x48xf32>, vector<1x48xf32> -> vector<1x48xf32>
    %32 = arith.addf %30, %31 : vector<1x48xf32>
    %33 = arith.negf %32 : vector<1x48xf32>
    %34 = math.exp %33 : vector<1x48xf32>
    %cst_16 = arith.constant 1.000000e+00 : f32
    %35 = vector.broadcast %cst_16 : f32 to vector<1x48xf32>
    %36 = arith.addf %35, %34 : vector<1x48xf32>
    %37 = arith.divf %35, %36 : vector<1x48xf32>
    %38 = vector.extract_strided_slice %37 {offsets = [0, 0], sizes = [1, 12], strides = [1, 1]} : vector<1x48xf32> to vector<1x12xf32>
    %39 = vector.extract_strided_slice %37 {offsets = [0, 12], sizes = [1, 12], strides = [1, 1]} : vector<1x48xf32> to vector<1x12xf32>
    %40 = vector.extract_strided_slice %37 {offsets = [0, 24], sizes = [1, 12], strides = [1, 1]} : vector<1x48xf32> to vector<1x12xf32>
    %41 = vector.extract_strided_slice %37 {offsets = [0, 36], sizes = [1, 12], strides = [1, 1]} : vector<1x48xf32> to vector<1x12xf32>
    %cst_17 = arith.constant 2.000000e+00 : f32
    %42 = vector.broadcast %cst_17 : f32 to vector<1x12xf32>
    %43 = arith.mulf %42, %41 : vector<1x12xf32>
    %cst_18 = arith.constant 1.000000e+00 : f32
    %44 = vector.broadcast %cst_18 : f32 to vector<1x12xf32>
    %45 = arith.subf %43, %44 : vector<1x12xf32>
    %46 = arith.mulf %39, %26 : vector<1x12xf32>
    %47 = arith.mulf %38, %45 : vector<1x12xf32>
    %48 = arith.addf %46, %47 : vector<1x12xf32>
    %49 = math.tanh %48 : vector<1x12xf32>
    %50 = arith.mulf %40, %49 : vector<1x12xf32>
    %c2_i32 = arith.constant 2 : i32
    %51 = arith.index_cast %c2_i32 : i32 to index
    %c0_19 = arith.constant 0 : index
    %52 = vector.load %arg15[%51, %c0_19] : memref<8x48xf32, #tpu.memory_space<vmem>>, vector<1x48xf32>
    %cst_20 = arith.constant dense<0.000000e+00> : vector<1x48xf32>
    %53 = tpu.matmul %50, %4, %cst_20 {dimension_numbers = #tpu.dot_dimension_numbers<[1], [0], [0], [1], [0, 0, 1, 1], [], []>} : vector<1x12xf32>, vector<12x48xf32>, vector<1x48xf32> -> vector<1x48xf32>
    %54 = arith.addf %52, %53 : vector<1x48xf32>
    %55 = arith.negf %54 : vector<1x48xf32>
    %56 = math.exp %55 : vector<1x48xf32>
    %cst_21 = arith.constant 1.000000e+00 : f32
    %57 = vector.broadcast %cst_21 : f32 to vector<1x48xf32>
    %58 = arith.addf %57, %56 : vector<1x48xf32>
    %59 = arith.divf %57, %58 : vector<1x48xf32>
    %60 = vector.extract_strided_slice %59 {offsets = [0, 0], sizes = [1, 12], strides = [1, 1]} : vector<1x48xf32> to vector<1x12xf32>
    %61 = vector.extract_strided_slice %59 {offsets = [0, 12], sizes = [1, 12], strides = [1, 1]} : vector<1x48xf32> to vector<1x12xf32>
    %62 = vector.extract_strided_slice %59 {offsets = [0, 24], sizes = [1, 12], strides = [1, 1]} : vector<1x48xf32> to vector<1x12xf32>
    %63 = vector.extract_strided_slice %59 {offsets = [0, 36], sizes = [1, 12], strides = [1, 1]} : vector<1x48xf32> to vector<1x12xf32>
    %cst_22 = arith.constant 2.000000e+00 : f32
    %64 = vector.broadcast %cst_22 : f32 to vector<1x12xf32>
    %65 = arith.mulf %64, %63 : vector<1x12xf32>
    %cst_23 = arith.constant 1.000000e+00 : f32
    %66 = vector.broadcast %cst_23 : f32 to vector<1x12xf32>
    %67 = arith.subf %65, %66 : vector<1x12xf32>
    %68 = arith.mulf %61, %48 : vector<1x12xf32>
    %69 = arith.mulf %60, %67 : vector<1x12xf32>
    %70 = arith.addf %68, %69 : vector<1x12xf32>
    %71 = math.tanh %70 : vector<1x12xf32>
    %72 = arith.mulf %62, %71 : vector<1x12xf32>
    %c3_i32 = arith.constant 3 : i32
    %73 = arith.index_cast %c3_i32 : i32 to index
    %c0_24 = arith.constant 0 : index
    %74 = vector.load %arg15[%73, %c0_24] : memref<8x48xf32, #tpu.memory_space<vmem>>, vector<1x48xf32>
    %cst_25 = arith.constant dense<0.000000e+00> : vector<1x48xf32>
    %75 = tpu.matmul %72, %4, %cst_25 {dimension_numbers = #tpu.dot_dimension_numbers<[1], [0], [0], [1], [0, 0, 1, 1], [], []>} : vector<1x12xf32>, vector<12x48xf32>, vector<1x48xf32> -> vector<1x48xf32>
    %76 = arith.addf %74, %75 : vector<1x48xf32>
    %77 = arith.negf %76 : vector<1x48xf32>
    %78 = math.exp %77 : vector<1x48xf32>
    %cst_26 = arith.constant 1.000000e+00 : f32
    %79 = vector.broadcast %cst_26 : f32 to vector<1x48xf32>
    %80 = arith.addf %79, %78 : vector<1x48xf32>
    %81 = arith.divf %79, %80 : vector<1x48xf32>
    %82 = vector.extract_strided_slice %81 {offsets = [0, 0], sizes = [1, 12], strides = [1, 1]} : vector<1x48xf32> to vector<1x12xf32>
    %83 = vector.extract_strided_slice %81 {offsets = [0, 12], sizes = [1, 12], strides = [1, 1]} : vector<1x48xf32> to vector<1x12xf32>
    %84 = vector.extract_strided_slice %81 {offsets = [0, 24], sizes = [1, 12], strides = [1, 1]} : vector<1x48xf32> to vector<1x12xf32>
    %85 = vector.extract_strided_slice %81 {offsets = [0, 36], sizes = [1, 12], strides = [1, 1]} : vector<1x48xf32> to vector<1x12xf32>
    %cst_27 = arith.constant 2.000000e+00 : f32
    %86 = vector.broadcast %cst_27 : f32 to vector<1x12xf32>
    %87 = arith.mulf %86, %85 : vector<1x12xf32>
    %cst_28 = arith.constant 1.000000e+00 : f32
    %88 = vector.broadcast %cst_28 : f32 to vector<1x12xf32>
    %89 = arith.subf %87, %88 : vector<1x12xf32>
    %90 = arith.mulf %83, %70 : vector<1x12xf32>
    %91 = arith.mulf %82, %89 : vector<1x12xf32>
    %92 = arith.addf %90, %91 : vector<1x12xf32>
    %93 = math.tanh %92 : vector<1x12xf32>
    %94 = arith.mulf %84, %93 : vector<1x12xf32>
    %c4_i32 = arith.constant 4 : i32
    %95 = arith.index_cast %c4_i32 : i32 to index
    %c0_29 = arith.constant 0 : index
    %96 = vector.load %arg15[%95, %c0_29] : memref<8x48xf32, #tpu.memory_space<vmem>>, vector<1x48xf32>
    %cst_30 = arith.constant dense<0.000000e+00> : vector<1x48xf32>
    %97 = tpu.matmul %94, %4, %cst_30 {dimension_numbers = #tpu.dot_dimension_numbers<[1], [0], [0], [1], [0, 0, 1, 1], [], []>} : vector<1x12xf32>, vector<12x48xf32>, vector<1x48xf32> -> vector<1x48xf32>
    %98 = arith.addf %96, %97 : vector<1x48xf32>
    %99 = arith.negf %98 : vector<1x48xf32>
    %100 = math.exp %99 : vector<1x48xf32>
    %cst_31 = arith.constant 1.000000e+00 : f32
    %101 = vector.broadcast %cst_31 : f32 to vector<1x48xf32>
    %102 = arith.addf %101, %100 : vector<1x48xf32>
    %103 = arith.divf %101, %102 : vector<1x48xf32>
    %104 = vector.extract_strided_slice %103 {offsets = [0, 0], sizes = [1, 12], strides = [1, 1]} : vector<1x48xf32> to vector<1x12xf32>
    %105 = vector.extract_strided_slice %103 {offsets = [0, 12], sizes = [1, 12], strides = [1, 1]} : vector<1x48xf32> to vector<1x12xf32>
    %106 = vector.extract_strided_slice %103 {offsets = [0, 24], sizes = [1, 12], strides = [1, 1]} : vector<1x48xf32> to vector<1x12xf32>
    %107 = vector.extract_strided_slice %103 {offsets = [0, 36], sizes = [1, 12], strides = [1, 1]} : vector<1x48xf32> to vector<1x12xf32>
    %cst_32 = arith.constant 2.000000e+00 : f32
    %108 = vector.broadcast %cst_32 : f32 to vector<1x12xf32>
    %109 = arith.mulf %108, %107 : vector<1x12xf32>
    %cst_33 = arith.constant 1.000000e+00 : f32
    %110 = vector.broadcast %cst_33 : f32 to vector<1x12xf32>
    %111 = arith.subf %109, %110 : vector<1x12xf32>
    %112 = arith.mulf %105, %92 : vector<1x12xf32>
    %113 = arith.mulf %104, %111 : vector<1x12xf32>
    %114 = arith.addf %112, %113 : vector<1x12xf32>
    %115 = math.tanh %114 : vector<1x12xf32>
    %116 = arith.mulf %106, %115 : vector<1x12xf32>
    %c5_i32 = arith.constant 5 : i32
    %117 = arith.index_cast %c5_i32 : i32 to index
    %c0_34 = arith.constant 0 : index
    %118 = vector.load %arg15[%117, %c0_34] : memref<8x48xf32, #tpu.memory_space<vmem>>, vector<1x48xf32>
    %cst_35 = arith.constant dense<0.000000e+00> : vector<1x48xf32>
    %119 = tpu.matmul %116, %4, %cst_35 {dimension_numbers = #tpu.dot_dimension_numbers<[1], [0], [0], [1], [0, 0, 1, 1], [], []>} : vector<1x12xf32>, vector<12x48xf32>, vector<1x48xf32> -> vector<1x48xf32>
    %120 = arith.addf %118, %119 : vector<1x48xf32>
    %121 = arith.negf %120 : vector<1x48xf32>
    %122 = math.exp %121 : vector<1x48xf32>
    %cst_36 = arith.constant 1.000000e+00 : f32
    %123 = vector.broadcast %cst_36 : f32 to vector<1x48xf32>
    %124 = arith.addf %123, %122 : vector<1x48xf32>
    %125 = arith.divf %123, %124 : vector<1x48xf32>
    %126 = vector.extract_strided_slice %125 {offsets = [0, 0], sizes = [1, 12], strides = [1, 1]} : vector<1x48xf32> to vector<1x12xf32>
    %127 = vector.extract_strided_slice %125 {offsets = [0, 12], sizes = [1, 12], strides = [1, 1]} : vector<1x48xf32> to vector<1x12xf32>
    %128 = vector.extract_strided_slice %125 {offsets = [0, 24], sizes = [1, 12], strides = [1, 1]} : vector<1x48xf32> to vector<1x12xf32>
    %129 = vector.extract_strided_slice %125 {offsets = [0, 36], sizes = [1, 12], strides = [1, 1]} : vector<1x48xf32> to vector<1x12xf32>
    %cst_37 = arith.constant 2.000000e+00 : f32
    %130 = vector.broadcast %cst_37 : f32 to vector<1x12xf32>
    %131 = arith.mulf %130, %129 : vector<1x12xf32>
    %cst_38 = arith.constant 1.000000e+00 : f32
    %132 = vector.broadcast %cst_38 : f32 to vector<1x12xf32>
    %133 = arith.subf %131, %132 : vector<1x12xf32>
    %134 = arith.mulf %127, %114 : vector<1x12xf32>
    %135 = arith.mulf %126, %133 : vector<1x12xf32>
    %136 = arith.addf %134, %135 : vector<1x12xf32>
    %137 = math.tanh %136 : vector<1x12xf32>
    %138 = arith.mulf %128, %137 : vector<1x12xf32>
    %c6_i32 = arith.constant 6 : i32
    %139 = arith.index_cast %c6_i32 : i32 to index
    %c0_39 = arith.constant 0 : index
    %140 = vector.load %arg15[%139, %c0_39] : memref<8x48xf32, #tpu.memory_space<vmem>>, vector<1x48xf32>
    %cst_40 = arith.constant dense<0.000000e+00> : vector<1x48xf32>
    %141 = tpu.matmul %138, %4, %cst_40 {dimension_numbers = #tpu.dot_dimension_numbers<[1], [0], [0], [1], [0, 0, 1, 1], [], []>} : vector<1x12xf32>, vector<12x48xf32>, vector<1x48xf32> -> vector<1x48xf32>
    %142 = arith.addf %140, %141 : vector<1x48xf32>
    %143 = arith.negf %142 : vector<1x48xf32>
    %144 = math.exp %143 : vector<1x48xf32>
    %cst_41 = arith.constant 1.000000e+00 : f32
    %145 = vector.broadcast %cst_41 : f32 to vector<1x48xf32>
    %146 = arith.addf %145, %144 : vector<1x48xf32>
    %147 = arith.divf %145, %146 : vector<1x48xf32>
    %148 = vector.extract_strided_slice %147 {offsets = [0, 0], sizes = [1, 12], strides = [1, 1]} : vector<1x48xf32> to vector<1x12xf32>
    %149 = vector.extract_strided_slice %147 {offsets = [0, 12], sizes = [1, 12], strides = [1, 1]} : vector<1x48xf32> to vector<1x12xf32>
    %150 = vector.extract_strided_slice %147 {offsets = [0, 24], sizes = [1, 12], strides = [1, 1]} : vector<1x48xf32> to vector<1x12xf32>
    %151 = vector.extract_strided_slice %147 {offsets = [0, 36], sizes = [1, 12], strides = [1, 1]} : vector<1x48xf32> to vector<1x12xf32>
    %cst_42 = arith.constant 2.000000e+00 : f32
    %152 = vector.broadcast %cst_42 : f32 to vector<1x12xf32>
    %153 = arith.mulf %152, %151 : vector<1x12xf32>
    %cst_43 = arith.constant 1.000000e+00 : f32
    %154 = vector.broadcast %cst_43 : f32 to vector<1x12xf32>
    %155 = arith.subf %153, %154 : vector<1x12xf32>
    %156 = arith.mulf %149, %136 : vector<1x12xf32>
    %157 = arith.mulf %148, %155 : vector<1x12xf32>
    %158 = arith.addf %156, %157 : vector<1x12xf32>
    %159 = math.tanh %158 : vector<1x12xf32>
    %160 = arith.mulf %150, %159 : vector<1x12xf32>
    %c7_i32 = arith.constant 7 : i32
    %161 = arith.index_cast %c7_i32 : i32 to index
    %c0_44 = arith.constant 0 : index
    %162 = vector.load %arg15[%161, %c0_44] : memref<8x48xf32, #tpu.memory_space<vmem>>, vector<1x48xf32>
    %cst_45 = arith.constant dense<0.000000e+00> : vector<1x48xf32>
    %163 = tpu.matmul %160, %4, %cst_45 {dimension_numbers = #tpu.dot_dimension_numbers<[1], [0], [0], [1], [0, 0, 1, 1], [], []>} : vector<1x12xf32>, vector<12x48xf32>, vector<1x48xf32> -> vector<1x48xf32>
    %164 = arith.addf %162, %163 : vector<1x48xf32>
    %165 = arith.negf %164 : vector<1x48xf32>
    %166 = math.exp %165 : vector<1x48xf32>
    %cst_46 = arith.constant 1.000000e+00 : f32
    %167 = vector.broadcast %cst_46 : f32 to vector<1x48xf32>
    %168 = arith.addf %167, %166 : vector<1x48xf32>
    %169 = arith.divf %167, %168 : vector<1x48xf32>
    %170 = vector.extract_strided_slice %169 {offsets = [0, 0], sizes = [1, 12], strides = [1, 1]} : vector<1x48xf32> to vector<1x12xf32>
    %171 = vector.extract_strided_slice %169 {offsets = [0, 12], sizes = [1, 12], strides = [1, 1]} : vector<1x48xf32> to vector<1x12xf32>
    %172 = vector.extract_strided_slice %169 {offsets = [0, 24], sizes = [1, 12], strides = [1, 1]} : vector<1x48xf32> to vector<1x12xf32>
    %173 = vector.extract_strided_slice %169 {offsets = [0, 36], sizes = [1, 12], strides = [1, 1]} : vector<1x48xf32> to vector<1x12xf32>
    %cst_47 = arith.constant 2.000000e+00 : f32
    %174 = vector.broadcast %cst_47 : f32 to vector<1x12xf32>
    %175 = arith.mulf %174, %173 : vector<1x12xf32>
    %cst_48 = arith.constant 1.000000e+00 : f32
    %176 = vector.broadcast %cst_48 : f32 to vector<1x12xf32>
    %177 = arith.subf %175, %176 : vector<1x12xf32>
    %178 = arith.mulf %171, %158 : vector<1x12xf32>
    %179 = arith.mulf %170, %177 : vector<1x12xf32>
    %180 = arith.addf %178, %179 : vector<1x12xf32>
    %181 = math.tanh %180 : vector<1x12xf32>
    %182 = arith.mulf %172, %181 : vector<1x12xf32>
    %c8_i32 = arith.constant 8 : i32
    %c0_49 = arith.constant 0 : index
    %c0_50 = arith.constant 0 : index
    %183 = vector.load %arg5[%c0_49, %c0_50] : memref<12x12xf32, #tpu.memory_space<vmem>>, vector<12x12xf32>
    %cst_51 = arith.constant dense<0.000000e+00> : vector<1x12xf32>
    %184 = tpu.matmul %182, %183, %cst_51 {dimension_numbers = #tpu.dot_dimension_numbers<[1], [0], [0], [1], [0, 0, 1, 1], [], []>} : vector<1x12xf32>, vector<12x12xf32>, vector<1x12xf32> -> vector<1x12xf32>
    %c0_52 = arith.constant 0 : index
    %c0_53 = arith.constant 0 : index
    %185 = vector.load %arg6[%c0_52, %c0_53] : memref<1x12xf32, #tpu.memory_space<vmem>>, vector<1x12xf32>
    %186 = arith.addf %184, %185 : vector<1x12xf32>
    %187 = vector.extract_strided_slice %186 {offsets = [0, 0], sizes = [1, 6], strides = [1, 1]} : vector<1x12xf32> to vector<1x6xf32>
    %188 = vector.extract_strided_slice %186 {offsets = [0, 6], sizes = [1, 6], strides = [1, 1]} : vector<1x12xf32> to vector<1x6xf32>
    %cst_54 = arith.constant 5.000000e-01 : f32
    %189 = vector.broadcast %cst_54 : f32 to vector<1x6xf32>
    %190 = arith.mulf %188, %189 : vector<1x6xf32>
    %191 = math.exp %190 : vector<1x6xf32>
    %c0_55 = arith.constant 0 : index
    %c0_56 = arith.constant 0 : index
    %192 = vector.load %arg2[%c0_55, %c0_56] : memref<1x6xf32, #tpu.memory_space<vmem>>, vector<1x6xf32>
    %193 = arith.mulf %191, %192 : vector<1x6xf32>
    %194 = arith.addf %187, %193 : vector<1x6xf32>
    %c0_57 = arith.constant 0 : index
    %c0_58 = arith.constant 0 : index
    %195 = vector.load %arg12[%c0_57, %c0_58] : memref<1x6xf32, #tpu.memory_space<vmem>>, vector<1x6xf32>
    tpu.vector_store %arg12[%c0_57, %c0_58], %187 {strides = array<i32>} : memref<1x6xf32, #tpu.memory_space<vmem>>, vector<1x6xf32>,
    %c0_59 = arith.constant 0 : index
    %c0_60 = arith.constant 0 : index
    %196 = vector.load %arg13[%c0_59, %c0_60] : memref<1x6xf32, #tpu.memory_space<vmem>>, vector<1x6xf32>
    tpu.vector_store %arg13[%c0_59, %c0_60], %188 {strides = array<i32>} : memref<1x6xf32, #tpu.memory_space<vmem>>, vector<1x6xf32>,
    %c0_61 = arith.constant 0 : index
    %c0_62 = arith.constant 0 : index
    %197 = vector.load %arg14[%c0_61, %c0_62] : memref<1x6xf32, #tpu.memory_space<vmem>>, vector<1x6xf32>
    tpu.vector_store %arg14[%c0_61, %c0_62], %194 {strides = array<i32>} : memref<1x6xf32, #tpu.memory_space<vmem>>, vector<1x6xf32>,
    %c0_63 = arith.constant 0 : index
    %c0_64 = arith.constant 0 : index
    %198 = vector.load %arg1[%c0_63, %c0_64] : memref<8x64xf32, #tpu.memory_space<vmem>>, vector<8x64xf32>
    %c0_65 = arith.constant 0 : index
    %c0_66 = arith.constant 0 : index
    %199 = vector.load %arg7[%c0_65, %c0_66] : memref<64x24xf32, #tpu.memory_space<vmem>>, vector<64x24xf32>
    %cst_67 = arith.constant dense<0.000000e+00> : vector<8x24xf32>
    %200 = tpu.matmul %198, %199, %cst_67 {dimension_numbers = #tpu.dot_dimension_numbers<[1], [0], [0], [1], [0, 0, 1, 1], [], []>} : vector<8x64xf32>, vector<64x24xf32>, vector<8x24xf32> -> vector<8x24xf32>
    %c0_68 = arith.constant 0 : index
    %c0_69 = arith.constant 0 : index
    %201 = vector.load %arg16[%c0_68, %c0_69] : memref<8x24xf32, #tpu.memory_space<vmem>>, vector<8x24xf32>
    tpu.vector_store %arg16[%c0_68, %c0_69], %200 {strides = array<i32>} : memref<8x24xf32, #tpu.memory_space<vmem>>, vector<8x24xf32>,
    %c0_70 = arith.constant 0 : index
    %c0_71 = arith.constant 0 : index
    %202 = vector.load %arg8[%c0_70, %c0_71] : memref<6x24xf32, #tpu.memory_space<vmem>>, vector<6x24xf32>
    %203 = math.tanh %194 : vector<1x6xf32>
    %cst_72 = arith.constant 0.000000e+00 : f32
    %204 = vector.broadcast %cst_72 : f32 to vector<1x6xf32>
    %c0_i32_73 = arith.constant 0 : i32
    %205 = arith.index_cast %c0_i32_73 : i32 to index
    %c0_74 = arith.constant 0 : index
    %206 = vector.load %arg16[%205, %c0_74] : memref<8x24xf32, #tpu.memory_space<vmem>>, vector<1x24xf32>
    %cst_75 = arith.constant dense<0.000000e+00> : vector<1x24xf32>
    %207 = tpu.matmul %203, %202, %cst_75 {dimension_numbers = #tpu.dot_dimension_numbers<[1], [0], [0], [1], [0, 0, 1, 1], [], []>} : vector<1x6xf32>, vector<6x24xf32>, vector<1x24xf32> -> vector<1x24xf32>
    %208 = arith.addf %206, %207 : vector<1x24xf32>
    %209 = arith.negf %208 : vector<1x24xf32>
    %210 = math.exp %209 : vector<1x24xf32>
    %cst_76 = arith.constant 1.000000e+00 : f32
    %211 = vector.broadcast %cst_76 : f32 to vector<1x24xf32>
    %212 = arith.addf %211, %210 : vector<1x24xf32>
    %213 = arith.divf %211, %212 : vector<1x24xf32>
    %214 = vector.extract_strided_slice %213 {offsets = [0, 0], sizes = [1, 6], strides = [1, 1]} : vector<1x24xf32> to vector<1x6xf32>
    %215 = vector.extract_strided_slice %213 {offsets = [0, 6], sizes = [1, 6], strides = [1, 1]} : vector<1x24xf32> to vector<1x6xf32>
    %216 = vector.extract_strided_slice %213 {offsets = [0, 12], sizes = [1, 6], strides = [1, 1]} : vector<1x24xf32> to vector<1x6xf32>
    %217 = vector.extract_strided_slice %213 {offsets = [0, 18], sizes = [1, 6], strides = [1, 1]} : vector<1x24xf32> to vector<1x6xf32>
    %cst_77 = arith.constant 2.000000e+00 : f32
    %218 = vector.broadcast %cst_77 : f32 to vector<1x6xf32>
    %219 = arith.mulf %218, %217 : vector<1x6xf32>
    %cst_78 = arith.constant 1.000000e+00 : f32
    %220 = vector.broadcast %cst_78 : f32 to vector<1x6xf32>
    %221 = arith.subf %219, %220 : vector<1x6xf32>
    %222 = arith.mulf %215, %204 : vector<1x6xf32>
    %223 = arith.mulf %214, %221 : vector<1x6xf32>
    %224 = arith.addf %222, %223 : vector<1x6xf32>
    %225 = math.tanh %224 : vector<1x6xf32>
    %226 = arith.mulf %216, %225 : vector<1x6xf32>
    %227 = arith.index_cast %c0_i32_73 : i32 to index
    %c0_79 = arith.constant 0 : index
    %228 = vector.load %arg17[%227, %c0_79] : memref<8x6xf32, #tpu.memory_space<vmem>>, vector<1x6xf32>
    tpu.vector_store %arg17[%227, %c0_79], %226 {strides = array<i32>} : memref<8x6xf32, #tpu.memory_space<vmem>>, vector<1x6xf32>,
    %c1_i32_80 = arith.constant 1 : i32
    %229 = arith.index_cast %c1_i32_80 : i32 to index
    %c0_81 = arith.constant 0 : index
    %230 = vector.load %arg16[%229, %c0_81] : memref<8x24xf32, #tpu.memory_space<vmem>>, vector<1x24xf32>
    %cst_82 = arith.constant dense<0.000000e+00> : vector<1x24xf32>
    %231 = tpu.matmul %226, %202, %cst_82 {dimension_numbers = #tpu.dot_dimension_numbers<[1], [0], [0], [1], [0, 0, 1, 1], [], []>} : vector<1x6xf32>, vector<6x24xf32>, vector<1x24xf32> -> vector<1x24xf32>
    %232 = arith.addf %230, %231 : vector<1x24xf32>
    %233 = arith.negf %232 : vector<1x24xf32>
    %234 = math.exp %233 : vector<1x24xf32>
    %cst_83 = arith.constant 1.000000e+00 : f32
    %235 = vector.broadcast %cst_83 : f32 to vector<1x24xf32>
    %236 = arith.addf %235, %234 : vector<1x24xf32>
    %237 = arith.divf %235, %236 : vector<1x24xf32>
    %238 = vector.extract_strided_slice %237 {offsets = [0, 0], sizes = [1, 6], strides = [1, 1]} : vector<1x24xf32> to vector<1x6xf32>
    %239 = vector.extract_strided_slice %237 {offsets = [0, 6], sizes = [1, 6], strides = [1, 1]} : vector<1x24xf32> to vector<1x6xf32>
    %240 = vector.extract_strided_slice %237 {offsets = [0, 12], sizes = [1, 6], strides = [1, 1]} : vector<1x24xf32> to vector<1x6xf32>
    %241 = vector.extract_strided_slice %237 {offsets = [0, 18], sizes = [1, 6], strides = [1, 1]} : vector<1x24xf32> to vector<1x6xf32>
    %cst_84 = arith.constant 2.000000e+00 : f32
    %242 = vector.broadcast %cst_84 : f32 to vector<1x6xf32>
    %243 = arith.mulf %242, %241 : vector<1x6xf32>
    %cst_85 = arith.constant 1.000000e+00 : f32
    %244 = vector.broadcast %cst_85 : f32 to vector<1x6xf32>
    %245 = arith.subf %243, %244 : vector<1x6xf32>
    %246 = arith.mulf %239, %224 : vector<1x6xf32>
    %247 = arith.mulf %238, %245 : vector<1x6xf32>
    %248 = arith.addf %246, %247 : vector<1x6xf32>
    %249 = math.tanh %248 : vector<1x6xf32>
    %250 = arith.mulf %240, %249 : vector<1x6xf32>
    %251 = arith.index_cast %c1_i32_80 : i32 to index
    %c0_86 = arith.constant 0 : index
    %252 = vector.load %arg17[%251, %c0_86] : memref<8x6xf32, #tpu.memory_space<vmem>>, vector<1x6xf32>
    tpu.vector_store %arg17[%251, %c0_86], %250 {strides = array<i32>} : memref<8x6xf32, #tpu.memory_space<vmem>>, vector<1x6xf32>,
    %c2_i32_87 = arith.constant 2 : i32
    %253 = arith.index_cast %c2_i32_87 : i32 to index
    %c0_88 = arith.constant 0 : index
    %254 = vector.load %arg16[%253, %c0_88] : memref<8x24xf32, #tpu.memory_space<vmem>>, vector<1x24xf32>
    %cst_89 = arith.constant dense<0.000000e+00> : vector<1x24xf32>
    %255 = tpu.matmul %250, %202, %cst_89 {dimension_numbers = #tpu.dot_dimension_numbers<[1], [0], [0], [1], [0, 0, 1, 1], [], []>} : vector<1x6xf32>, vector<6x24xf32>, vector<1x24xf32> -> vector<1x24xf32>
    %256 = arith.addf %254, %255 : vector<1x24xf32>
    %257 = arith.negf %256 : vector<1x24xf32>
    %258 = math.exp %257 : vector<1x24xf32>
    %cst_90 = arith.constant 1.000000e+00 : f32
    %259 = vector.broadcast %cst_90 : f32 to vector<1x24xf32>
    %260 = arith.addf %259, %258 : vector<1x24xf32>
    %261 = arith.divf %259, %260 : vector<1x24xf32>
    %262 = vector.extract_strided_slice %261 {offsets = [0, 0], sizes = [1, 6], strides = [1, 1]} : vector<1x24xf32> to vector<1x6xf32>
    %263 = vector.extract_strided_slice %261 {offsets = [0, 6], sizes = [1, 6], strides = [1, 1]} : vector<1x24xf32> to vector<1x6xf32>
    %264 = vector.extract_strided_slice %261 {offsets = [0, 12], sizes = [1, 6], strides = [1, 1]} : vector<1x24xf32> to vector<1x6xf32>
    %265 = vector.extract_strided_slice %261 {offsets = [0, 18], sizes = [1, 6], strides = [1, 1]} : vector<1x24xf32> to vector<1x6xf32>
    %cst_91 = arith.constant 2.000000e+00 : f32
    %266 = vector.broadcast %cst_91 : f32 to vector<1x6xf32>
    %267 = arith.mulf %266, %265 : vector<1x6xf32>
    %cst_92 = arith.constant 1.000000e+00 : f32
    %268 = vector.broadcast %cst_92 : f32 to vector<1x6xf32>
    %269 = arith.subf %267, %268 : vector<1x6xf32>
    %270 = arith.mulf %263, %248 : vector<1x6xf32>
    %271 = arith.mulf %262, %269 : vector<1x6xf32>
    %272 = arith.addf %270, %271 : vector<1x6xf32>
    %273 = math.tanh %272 : vector<1x6xf32>
    %274 = arith.mulf %264, %273 : vector<1x6xf32>
    %275 = arith.index_cast %c2_i32_87 : i32 to index
    %c0_93 = arith.constant 0 : index
    %276 = vector.load %arg17[%275, %c0_93] : memref<8x6xf32, #tpu.memory_space<vmem>>, vector<1x6xf32>
    tpu.vector_store %arg17[%275, %c0_93], %274 {strides = array<i32>} : memref<8x6xf32, #tpu.memory_space<vmem>>, vector<1x6xf32>,
    %c3_i32_94 = arith.constant 3 : i32
    %277 = arith.index_cast %c3_i32_94 : i32 to index
    %c0_95 = arith.constant 0 : index
    %278 = vector.load %arg16[%277, %c0_95] : memref<8x24xf32, #tpu.memory_space<vmem>>, vector<1x24xf32>
    %cst_96 = arith.constant dense<0.000000e+00> : vector<1x24xf32>
    %279 = tpu.matmul %274, %202, %cst_96 {dimension_numbers = #tpu.dot_dimension_numbers<[1], [0], [0], [1], [0, 0, 1, 1], [], []>} : vector<1x6xf32>, vector<6x24xf32>, vector<1x24xf32> -> vector<1x24xf32>
    %280 = arith.addf %278, %279 : vector<1x24xf32>
    %281 = arith.negf %280 : vector<1x24xf32>
    %282 = math.exp %281 : vector<1x24xf32>
    %cst_97 = arith.constant 1.000000e+00 : f32
    %283 = vector.broadcast %cst_97 : f32 to vector<1x24xf32>
    %284 = arith.addf %283, %282 : vector<1x24xf32>
    %285 = arith.divf %283, %284 : vector<1x24xf32>
    %286 = vector.extract_strided_slice %285 {offsets = [0, 0], sizes = [1, 6], strides = [1, 1]} : vector<1x24xf32> to vector<1x6xf32>
    %287 = vector.extract_strided_slice %285 {offsets = [0, 6], sizes = [1, 6], strides = [1, 1]} : vector<1x24xf32> to vector<1x6xf32>
    %288 = vector.extract_strided_slice %285 {offsets = [0, 12], sizes = [1, 6], strides = [1, 1]} : vector<1x24xf32> to vector<1x6xf32>
    %289 = vector.extract_strided_slice %285 {offsets = [0, 18], sizes = [1, 6], strides = [1, 1]} : vector<1x24xf32> to vector<1x6xf32>
    %cst_98 = arith.constant 2.000000e+00 : f32
    %290 = vector.broadcast %cst_98 : f32 to vector<1x6xf32>
    %291 = arith.mulf %290, %289 : vector<1x6xf32>
    %cst_99 = arith.constant 1.000000e+00 : f32
    %292 = vector.broadcast %cst_99 : f32 to vector<1x6xf32>
    %293 = arith.subf %291, %292 : vector<1x6xf32>
    %294 = arith.mulf %287, %272 : vector<1x6xf32>
    %295 = arith.mulf %286, %293 : vector<1x6xf32>
    %296 = arith.addf %294, %295 : vector<1x6xf32>
    %297 = math.tanh %296 : vector<1x6xf32>
    %298 = arith.mulf %288, %297 : vector<1x6xf32>
    %299 = arith.index_cast %c3_i32_94 : i32 to index
    %c0_100 = arith.constant 0 : index
    %300 = vector.load %arg17[%299, %c0_100] : memref<8x6xf32, #tpu.memory_space<vmem>>, vector<1x6xf32>
    tpu.vector_store %arg17[%299, %c0_100], %298 {strides = array<i32>} : memref<8x6xf32, #tpu.memory_space<vmem>>, vector<1x6xf32>,
    %c4_i32_101 = arith.constant 4 : i32
    %301 = arith.index_cast %c4_i32_101 : i32 to index
    %c0_102 = arith.constant 0 : index
    %302 = vector.load %arg16[%301, %c0_102] : memref<8x24xf32, #tpu.memory_space<vmem>>, vector<1x24xf32>
    %cst_103 = arith.constant dense<0.000000e+00> : vector<1x24xf32>
    %303 = tpu.matmul %298, %202, %cst_103 {dimension_numbers = #tpu.dot_dimension_numbers<[1], [0], [0], [1], [0, 0, 1, 1], [], []>} : vector<1x6xf32>, vector<6x24xf32>, vector<1x24xf32> -> vector<1x24xf32>
    %304 = arith.addf %302, %303 : vector<1x24xf32>
    %305 = arith.negf %304 : vector<1x24xf32>
    %306 = math.exp %305 : vector<1x24xf32>
    %cst_104 = arith.constant 1.000000e+00 : f32
    %307 = vector.broadcast %cst_104 : f32 to vector<1x24xf32>
    %308 = arith.addf %307, %306 : vector<1x24xf32>
    %309 = arith.divf %307, %308 : vector<1x24xf32>
    %310 = vector.extract_strided_slice %309 {offsets = [0, 0], sizes = [1, 6], strides = [1, 1]} : vector<1x24xf32> to vector<1x6xf32>
    %311 = vector.extract_strided_slice %309 {offsets = [0, 6], sizes = [1, 6], strides = [1, 1]} : vector<1x24xf32> to vector<1x6xf32>
    %312 = vector.extract_strided_slice %309 {offsets = [0, 12], sizes = [1, 6], strides = [1, 1]} : vector<1x24xf32> to vector<1x6xf32>
    %313 = vector.extract_strided_slice %309 {offsets = [0, 18], sizes = [1, 6], strides = [1, 1]} : vector<1x24xf32> to vector<1x6xf32>
    %cst_105 = arith.constant 2.000000e+00 : f32
    %314 = vector.broadcast %cst_105 : f32 to vector<1x6xf32>
    %315 = arith.mulf %314, %313 : vector<1x6xf32>
    %cst_106 = arith.constant 1.000000e+00 : f32
    %316 = vector.broadcast %cst_106 : f32 to vector<1x6xf32>
    %317 = arith.subf %315, %316 : vector<1x6xf32>
    %318 = arith.mulf %311, %296 : vector<1x6xf32>
    %319 = arith.mulf %310, %317 : vector<1x6xf32>
    %320 = arith.addf %318, %319 : vector<1x6xf32>
    %321 = math.tanh %320 : vector<1x6xf32>
    %322 = arith.mulf %312, %321 : vector<1x6xf32>
    %323 = arith.index_cast %c4_i32_101 : i32 to index
    %c0_107 = arith.constant 0 : index
    %324 = vector.load %arg17[%323, %c0_107] : memref<8x6xf32, #tpu.memory_space<vmem>>, vector<1x6xf32>
    tpu.vector_store %arg17[%323, %c0_107], %322 {strides = array<i32>} : memref<8x6xf32, #tpu.memory_space<vmem>>, vector<1x6xf32>,
    %c5_i32_108 = arith.constant 5 : i32
    %325 = arith.index_cast %c5_i32_108 : i32 to index
    %c0_109 = arith.constant 0 : index
    %326 = vector.load %arg16[%325, %c0_109] : memref<8x24xf32, #tpu.memory_space<vmem>>, vector<1x24xf32>
    %cst_110 = arith.constant dense<0.000000e+00> : vector<1x24xf32>
    %327 = tpu.matmul %322, %202, %cst_110 {dimension_numbers = #tpu.dot_dimension_numbers<[1], [0], [0], [1], [0, 0, 1, 1], [], []>} : vector<1x6xf32>, vector<6x24xf32>, vector<1x24xf32> -> vector<1x24xf32>
    %328 = arith.addf %326, %327 : vector<1x24xf32>
    %329 = arith.negf %328 : vector<1x24xf32>
    %330 = math.exp %329 : vector<1x24xf32>
    %cst_111 = arith.constant 1.000000e+00 : f32
    %331 = vector.broadcast %cst_111 : f32 to vector<1x24xf32>
    %332 = arith.addf %331, %330 : vector<1x24xf32>
    %333 = arith.divf %331, %332 : vector<1x24xf32>
    %334 = vector.extract_strided_slice %333 {offsets = [0, 0], sizes = [1, 6], strides = [1, 1]} : vector<1x24xf32> to vector<1x6xf32>
    %335 = vector.extract_strided_slice %333 {offsets = [0, 6], sizes = [1, 6], strides = [1, 1]} : vector<1x24xf32> to vector<1x6xf32>
    %336 = vector.extract_strided_slice %333 {offsets = [0, 12], sizes = [1, 6], strides = [1, 1]} : vector<1x24xf32> to vector<1x6xf32>
    %337 = vector.extract_strided_slice %333 {offsets = [0, 18], sizes = [1, 6], strides = [1, 1]} : vector<1x24xf32> to vector<1x6xf32>
    %cst_112 = arith.constant 2.000000e+00 : f32
    %338 = vector.broadcast %cst_112 : f32 to vector<1x6xf32>
    %339 = arith.mulf %338, %337 : vector<1x6xf32>
    %cst_113 = arith.constant 1.000000e+00 : f32
    %340 = vector.broadcast %cst_113 : f32 to vector<1x6xf32>
    %341 = arith.subf %339, %340 : vector<1x6xf32>
    %342 = arith.mulf %335, %320 : vector<1x6xf32>
    %343 = arith.mulf %334, %341 : vector<1x6xf32>
    %344 = arith.addf %342, %343 : vector<1x6xf32>
    %345 = math.tanh %344 : vector<1x6xf32>
    %346 = arith.mulf %336, %345 : vector<1x6xf32>
    %347 = arith.index_cast %c5_i32_108 : i32 to index
    %c0_114 = arith.constant 0 : index
    %348 = vector.load %arg17[%347, %c0_114] : memref<8x6xf32, #tpu.memory_space<vmem>>, vector<1x6xf32>
    tpu.vector_store %arg17[%347, %c0_114], %346 {strides = array<i32>} : memref<8x6xf32, #tpu.memory_space<vmem>>, vector<1x6xf32>,
    %c6_i32_115 = arith.constant 6 : i32
    %349 = arith.index_cast %c6_i32_115 : i32 to index
    %c0_116 = arith.constant 0 : index
    %350 = vector.load %arg16[%349, %c0_116] : memref<8x24xf32, #tpu.memory_space<vmem>>, vector<1x24xf32>
    %cst_117 = arith.constant dense<0.000000e+00> : vector<1x24xf32>
    %351 = tpu.matmul %346, %202, %cst_117 {dimension_numbers = #tpu.dot_dimension_numbers<[1], [0], [0], [1], [0, 0, 1, 1], [], []>} : vector<1x6xf32>, vector<6x24xf32>, vector<1x24xf32> -> vector<1x24xf32>
    %352 = arith.addf %350, %351 : vector<1x24xf32>
    %353 = arith.negf %352 : vector<1x24xf32>
    %354 = math.exp %353 : vector<1x24xf32>
    %cst_118 = arith.constant 1.000000e+00 : f32
    %355 = vector.broadcast %cst_118 : f32 to vector<1x24xf32>
    %356 = arith.addf %355, %354 : vector<1x24xf32>
    %357 = arith.divf %355, %356 : vector<1x24xf32>
    %358 = vector.extract_strided_slice %357 {offsets = [0, 0], sizes = [1, 6], strides = [1, 1]} : vector<1x24xf32> to vector<1x6xf32>
    %359 = vector.extract_strided_slice %357 {offsets = [0, 6], sizes = [1, 6], strides = [1, 1]} : vector<1x24xf32> to vector<1x6xf32>
    %360 = vector.extract_strided_slice %357 {offsets = [0, 12], sizes = [1, 6], strides = [1, 1]} : vector<1x24xf32> to vector<1x6xf32>
    %361 = vector.extract_strided_slice %357 {offsets = [0, 18], sizes = [1, 6], strides = [1, 1]} : vector<1x24xf32> to vector<1x6xf32>
    %cst_119 = arith.constant 2.000000e+00 : f32
    %362 = vector.broadcast %cst_119 : f32 to vector<1x6xf32>
    %363 = arith.mulf %362, %361 : vector<1x6xf32>
    %cst_120 = arith.constant 1.000000e+00 : f32
    %364 = vector.broadcast %cst_120 : f32 to vector<1x6xf32>
    %365 = arith.subf %363, %364 : vector<1x6xf32>
    %366 = arith.mulf %359, %344 : vector<1x6xf32>
    %367 = arith.mulf %358, %365 : vector<1x6xf32>
    %368 = arith.addf %366, %367 : vector<1x6xf32>
    %369 = math.tanh %368 : vector<1x6xf32>
    %370 = arith.mulf %360, %369 : vector<1x6xf32>
    %371 = arith.index_cast %c6_i32_115 : i32 to index
    %c0_121 = arith.constant 0 : index
    %372 = vector.load %arg17[%371, %c0_121] : memref<8x6xf32, #tpu.memory_space<vmem>>, vector<1x6xf32>
    tpu.vector_store %arg17[%371, %c0_121], %370 {strides = array<i32>} : memref<8x6xf32, #tpu.memory_space<vmem>>, vector<1x6xf32>,
    %c7_i32_122 = arith.constant 7 : i32
    %373 = arith.index_cast %c7_i32_122 : i32 to index
    %c0_123 = arith.constant 0 : index
    %374 = vector.load %arg16[%373, %c0_123] : memref<8x24xf32, #tpu.memory_space<vmem>>, vector<1x24xf32>
    %cst_124 = arith.constant dense<0.000000e+00> : vector<1x24xf32>
    %375 = tpu.matmul %370, %202, %cst_124 {dimension_numbers = #tpu.dot_dimension_numbers<[1], [0], [0], [1], [0, 0, 1, 1], [], []>} : vector<1x6xf32>, vector<6x24xf32>, vector<1x24xf32> -> vector<1x24xf32>
    %376 = arith.addf %374, %375 : vector<1x24xf32>
    %377 = arith.negf %376 : vector<1x24xf32>
    %378 = math.exp %377 : vector<1x24xf32>
    %cst_125 = arith.constant 1.000000e+00 : f32
    %379 = vector.broadcast %cst_125 : f32 to vector<1x24xf32>
    %380 = arith.addf %379, %378 : vector<1x24xf32>
    %381 = arith.divf %379, %380 : vector<1x24xf32>
    %382 = vector.extract_strided_slice %381 {offsets = [0, 0], sizes = [1, 6], strides = [1, 1]} : vector<1x24xf32> to vector<1x6xf32>
    %383 = vector.extract_strided_slice %381 {offsets = [0, 6], sizes = [1, 6], strides = [1, 1]} : vector<1x24xf32> to vector<1x6xf32>
    %384 = vector.extract_strided_slice %381 {offsets = [0, 12], sizes = [1, 6], strides = [1, 1]} : vector<1x24xf32> to vector<1x6xf32>
    %385 = vector.extract_strided_slice %381 {offsets = [0, 18], sizes = [1, 6], strides = [1, 1]} : vector<1x24xf32> to vector<1x6xf32>
    %cst_126 = arith.constant 2.000000e+00 : f32
    %386 = vector.broadcast %cst_126 : f32 to vector<1x6xf32>
    %387 = arith.mulf %386, %385 : vector<1x6xf32>
    %cst_127 = arith.constant 1.000000e+00 : f32
    %388 = vector.broadcast %cst_127 : f32 to vector<1x6xf32>
    %389 = arith.subf %387, %388 : vector<1x6xf32>
    %390 = arith.mulf %383, %368 : vector<1x6xf32>
    %391 = arith.mulf %382, %389 : vector<1x6xf32>
    %392 = arith.addf %390, %391 : vector<1x6xf32>
    %393 = math.tanh %392 : vector<1x6xf32>
    %394 = arith.mulf %384, %393 : vector<1x6xf32>
    %395 = arith.index_cast %c7_i32_122 : i32 to index
    %c0_128 = arith.constant 0 : index
    %396 = vector.load %arg17[%395, %c0_128] : memref<8x6xf32, #tpu.memory_space<vmem>>, vector<1x6xf32>
    tpu.vector_store %arg17[%395, %c0_128], %394 {strides = array<i32>} : memref<8x6xf32, #tpu.memory_space<vmem>>, vector<1x6xf32>,
    %c8_i32_129 = arith.constant 8 : i32
    %c0_130 = arith.constant 0 : index
    %c0_131 = arith.constant 0 : index
    %397 = vector.load %arg17[%c0_130, %c0_131] : memref<8x6xf32, #tpu.memory_space<vmem>>, vector<8x6xf32>
    %c0_132 = arith.constant 0 : index
    %c0_133 = arith.constant 0 : index
    %398 = vector.load %arg9[%c0_132, %c0_133] : memref<6x128xf32, #tpu.memory_space<vmem>>, vector<6x128xf32>
    %cst_134 = arith.constant dense<0.000000e+00> : vector<8x128xf32>
    %399 = tpu.matmul %397, %398, %cst_134 {dimension_numbers = #tpu.dot_dimension_numbers<[1], [0], [0], [1], [0, 0, 1, 1], [], []>} : vector<8x6xf32>, vector<6x128xf32>, vector<8x128xf32> -> vector<8x128xf32>
    %c0_135 = arith.constant 0 : index
    %c0_136 = arith.constant 0 : index
    %400 = vector.load %arg10[%c0_135, %c0_136] : memref<1x128xf32, #tpu.memory_space<vmem>>, vector<1x128xf32>
    %401 = vector.broadcast %400 : vector<1x128xf32> to vector<8x128xf32>
    %402 = arith.addf %399, %401 : vector<8x128xf32>
    %cst_137 = arith.constant dense<0xFF800000> : vector<8xf32>
    %403 = vector.multi_reduction <maximumf>, %402, %cst_137 [1] : vector<8x128xf32> to vector<8xf32>
    %404 = vector.shape_cast %403 : vector<8xf32> to vector<8x1xf32>
    %405 = vector.broadcast %404 : vector<8x1xf32> to vector<8x128xf32>
    %406 = arith.subf %402, %405 : vector<8x128xf32>
    %407 = math.exp %406 : vector<8x128xf32>
    %cst_138 = arith.constant dense<0.000000e+00> : vector<8xf32>
    %408 = vector.multi_reduction <add>, %407, %cst_138 [1] : vector<8x128xf32> to vector<8xf32>
    %409 = vector.shape_cast %408 : vector<8xf32> to vector<8x1xf32>
    %410 = vector.broadcast %409 : vector<8x1xf32> to vector<8x128xf32>
    %411 = arith.divf %407, %410 : vector<8x128xf32>
    %c0_139 = arith.constant 0 : index
    %c0_140 = arith.constant 0 : index
    %412 = vector.load %arg11[%c0_139, %c0_140] : memref<8x128xf32, #tpu.memory_space<vmem>>, vector<8x128xf32>
    tpu.vector_store %arg11[%c0_139, %c0_140], %411 {strides = array<i32>} : memref<8x128xf32, #tpu.memory_space<vmem>>, vector<8x128xf32>,
    return
  }
}

</mosaic_0001>

<bundles_post_ra>
// kernel: tpu_custom_call.1
= control target key start
LH: loop header
LB: loop body
LE: loop exit
PB: predicated region body
PF: predicated region fallthrough
CT: control target
= control target key end

     0   :  { %20 = vsyncpa [#allocation6], 0  ;;  %s3125_s0 = inlined_call_operand.vmem [shape: f32[8,64], index: 0, kind: input, shape index: {}]   ;;  %s3126_s1 = inlined_call_operand.vmem [shape: f32[8,64], index: 1, kind: input, shape index: {}]   ;;  %s3127_s2 = inlined_call_operand.vmem [shape: f32[1,6], index: 2, kind: input, shape index: {}]   ;;  %s3128_s3 = inlined_call_operand.vmem [shape: f32[64,48], index: 3, kind: input, shape index: {}]   ;;  %s3129_s4 = inlined_call_operand.vmem [shape: f32[12,48], index: 4, kind: input, shape index: {}]   ;;  %s3130_s5 = inlined_call_operand.vmem [shape: f32[12,12], index: 5, kind: input, shape index: {}]   ;;  %s3131_s6 = inlined_call_operand.vmem [shape: f32[1,12], index: 6, kind: input, shape index: {}]   ;;  %s3132_s7 = inlined_call_operand.vmem [shape: f32[64,24], index: 7, kind: input, shape index: {}]   ;;  %s3133_s8 = inlined_call_operand.vmem [shape: f32[6,24], index: 8, kind: input, shape index: {}]   ;;  %s3134_s9 = inlined_call_operand.vmem [shape: f32[6,128], index: 9, kind: input, shape index: {}]   ;;  %s3135_s10 = inlined_call_operand.vmem [shape: f32[1,128], index: 10, kind: input, shape index: {}]   ;;  %s3136_s11 = inlined_call_operand.hbm [shape: f32[8,128], index: 11, kind: output, shape index: {0}]   ;;  %s3137_s12 = inlined_call_operand.hbm [shape: f32[1,6], index: 12, kind: output, shape index: {1}]   ;;  %s3138_s13 = inlined_call_operand.hbm [shape: f32[1,6], index: 13, kind: output, shape index: {2}]   ;;  %s3139_s14 = inlined_call_operand.hbm [shape: f32[1,6], index: 14, kind: output, shape index: {3}]  }
   0x1   :  { %21 = vsyncpa [#allocation8], 0  ;;  %v46_v0 = vld [vmem:[%s3128_s3] sm:$0xff]  ;;  %v47_v1 = vld [vmem:[%s3128_s3 + $0x8] sm:$0xff]  ;;  %v2685_v3 = vmov 0.0|0.0   ;;  %vm2686_vm0 = vmmov 0  }
   0x2   :  { %v48_v2 = vld [vmem:[%s3128_s3 + $0x10] sm:$0xff]  ;;  %2412 = vmatprep.subr.bf16.mxu0 %v2685_v3  ;;  %v2413_v4 = vpack.c.bf16 %v47_v1, %v46_v0  ;;  %v49_v5 = vld [vmem:[%s3128_s3 + $0x18] sm:$0xff]  ;;  %v2687_v6 = vmov 0.0   ;;  %vm137_vm1 = vcmask 1043456   ;;  %2424 = vmatprep.subr.bf16.mxu1 %v2685_v3  ;;  %v130_v8 = vld [vmem:[%s3129_s4] sm:$0xff]  ;;  %vm2688_vm2 = vmmov 1  }
   0x3   :  { %2282 = vmatprep.mubr.msk.f32.mxu0 %vm2686_vm0, %v2687_v6  ;;  %2289 = vmatprep.mubr.msk.f32.mxu1 %vm2686_vm0, %v2687_v6  ;;  %v2416_v7 = vpack.c.bf16 %v49_v5, %v48_v2  ;;  %v131_v9 = vld [vmem:[%s3129_s4 + $0x8] sm:$0xf]  ;;  %vm2799_vm3 = vmpackc.low %vm137_vm1, %vm2688_vm2  ;;  %v50_v11 = vld [vmem:[%s3128_s3 + $0x20] sm:$0xff] }
   0x4   :  { %2414 = vmatpush3.bf16.msra.mxu0 %v2413_v4  ;;  %v51_v12 = vld [vmem:[%s3128_s3 + $0x28] sm:$0xff]  ;;  %v2810_v13 = vpack.c.bf16 %v131_v9, %v130_v8 }
   0x5   :  { %2415 = vmatprep.subr.bf16.mxu0 %v2685_v3 }
   0x6   :  { %22 = vsyncpa [#allocation11], 0  ;;  %2427 = vmatpush3.bf16.msk.msra.mxu1 %vm2799_vm3, %v2810_v13  ;;  %v2419_v14 = vpack.c.bf16 %v51_v12, %v50_v11  ;;  %v52_v15 = vld [vmem:[%s3128_s3 + $0x30] sm:$0xff]  ;;  %v53_v16 = vld [vmem:[%s3128_s3 + $0x38] sm:$0xff]  ;;  %vm54_vm4 = vcmask 523264   ;;  %vm128_vm5 = vcmask 392192  }
   0x7   :  { %2428 = vmatprep.subr.bf16.mxu1 %v2685_v3  ;;  %v2422_v17 = vpack.c.bf16 %v53_v16, %v52_v15  ;;  %v45_v18 = vld [vmem:[%s3125_s0] sm:$0xff]  ;;  %s2689_s0 = smov 92   ;;  %s2690_s3 = smov 12   ;;  %vm133_vm6 = vcmask 97280   ;;  %vm1050_vm7 = vcmask 40960   ;;  %vm1149_vm8 = vcmask 1045504  }
   0x8   :  { %2417 = vmatpush3.bf16.msra.mxu0 %v2416_v7  ;;  %s2691_s18 = smov 104   ;;  %s2692_s25 = smov 6   ;;  %v1059_v10 = vld [vmem:[%s3132_s7] sm:$0xff]  ;;  %vm1145_vm9 = vcmask 48128   ;;  %vm1140_vm10 = vcmask 195584  }
   0x9   :  { %2418 = vmatprep.subr.bf16.mxu0 %v2685_v3  ;;  %2290 = vmatmul.mubr.f32.vlgmr.msra.gmra.mrb[0].mxu1 %v2687_v6 }
   0xa   :  { %2431 = vmatpush3.bf16.msk.msra.mxu1 %vm2799_vm3, %v2810_v13  ;;  %2296 = vmatprep.mubr.msk.f32.mxu1 %vm2686_vm0, %v2687_v6 }
   0xb   :  { %2432 = vmatprep.subr.bf16.mxu1 %v2685_v3 }
   0xc   :  { %2420 = vmatpush3.bf16.msra.mxu0 %v2419_v14 }
   0xd   :  { %2421 = vmatprep.subr.bf16.mxu0 %v2685_v3 }
  0x10   :  { %2423 = vmatpush3.bf16.msra.mxu0 %v2422_v17 }
  0x11   :  { %2440 = vmatprep.subr.bf16.mxu0 %v2685_v3 }
  0x13   :  { %2283 = vmatmul.mubr.msk.f32.vlgmr.msra.gmra.mrb[0].mxu0 %vm54_vm4, %v45_v18 }
  0x14   :  { %2443 = vmatpush3.bf16.msk.msra.mxu0 %vm2799_vm3, %v2810_v13  ;;  %2317 = vmatprep.mubr.msk.f32.mxu0 %vm2686_vm0, %v2687_v6 }
  0x15   :  { %2448 = vmatprep.subr.bf16.mxu0 %v2685_v3 }
  0xdc   :  { %v207_v19 = vpop.f32.mrb[0].mxu1 }
  0xdd   :  { %v2291_v20 = vpop.f32.mrb[1].mxu1 }
  0xe6   :  { %v124_v21 = vpop.f32.mrb[0].mxu0 }
  0xe7   :  { %129 = vst.msk [vmem:[#allocation2] sm:$0xff] %vm128_vm5, %v124_v21  ;;  %v2284_v22 = vpop.f32.mrb[1].mxu0 }
  0xee   :  { %v132_v23 = vld [vmem:[#allocation2] sm:$0x1]  ;;  %v237_v40 = vld [vmem:[#allocation2 + $0x1] sm:$0x1]  ;;  %v339_v59 = vld [vmem:[#allocation2 + $0x2] sm:$0x1] }
  0xef   :  { %v211_v24 = vadd.f32 %v207_v19, %v132_v23  ;;  %v441_v18 = vld [vmem:[#allocation2 + $0x3] sm:$0x1] }
  0xf1   :  { %v2134_v25 = vmul.f32 -1.442695, %v211_v24 }
  0xf3   :  { %2487 = vpow2.f32 %v2134_v25 }
  0xfd   :  { %v2488_v26 = vpop.eup %2487 }
  0xfe   :  { %v215_v27 = vadd.f32 1.0, %v2488_v26 }
 0x100   :  { %2489 = vrcp.f32 %v215_v27 }
 0x10a   :  { %v2490_v28 = vpop.eup %2489 }
 0x10b   :  { %v218_v29 = vmul.f32 2.0, %v2490_v28  ;;  %v220_v33 = vmul.f32 0.0, %v2490_v28 }
 0x10d   :  { %v2135_v30 = vadd.f32 -1.0, %v218_v29 }
 0x10f   :  { %222 = vrot.lane.b32.xlu0 %v2135_v30, %s2689_s0 }
 0x181   :  { %v223_v31 = vpop.permute.xlu0 %222 }
 0x182   :  { %v225_v32 = vmul.f32 %v2490_v28, %v223_v31 }
 0x184   :  { %227 = vrot.lane.b32.xlu0 %v225_v32, %s2690_s3 }
 0x1f6   :  { %v228_v34 = vpop.permute.xlu0 %227 }
 0x1f7   :  { %v230_v35 = vadd.f32 %v228_v34, %v220_v33 }
 0x1f9   :  { %2491 = vtanh.f32 %v230_v35 }
 0x203   :  { %v2492_v36 = vpop.eup %2491 }
 0x204   :  { %233 = vrot.lane.b32.xlu1 %v2492_v36, %s2690_s3 }
 0x276   :  { %v234_v37 = vpop.permute.xlu1 %233 }
 0x277   :  { %v236_v38 = vmul.f32 %v2490_v28, %v234_v37  ;;  %v543_v37 = vld [vmem:[#allocation2 + $0x4] sm:$0x1] }
 0x279   :  { %239 = vrot.lane.b32.xlu1 %v236_v38, %s2691_s18 }
 0x2eb   :  { %v240_v39 = vpop.permute.xlu1 %239 }
 0x2ec   :  { %2297 = vmatmul.mubr.msk.f32.vlgmr.msra.gmra.mrb[2].mxu1 %vm133_vm6, %v240_v39 }
 0x2ed   :  { %2435 = vmatpush3.bf16.msk.msra.mxu1 %vm2799_vm3, %v2810_v13  ;;  %2303 = vmatprep.mubr.msk.f32.mxu1 %vm2686_vm0, %v2687_v6 }
 0x2ee   :  { %2436 = vmatprep.subr.bf16.mxu1 %v2685_v3 }
 0x3bf   :  { %v309_v41 = vpop.f32.mrb[2].mxu1 }
 0x3c0   :  { %v313_v42 = vadd.f32 %v309_v41, %v237_v40  ;;  %v2298_v43 = vpop.f32.mrb[3].mxu1 }
 0x3c2   :  { %v2138_v44 = vmul.f32 -1.442695, %v313_v42 }
 0x3c4   :  { %2493 = vpow2.f32 %v2138_v44 }
 0x3ce   :  { %v2494_v45 = vpop.eup %2493 }
 0x3cf   :  { %v317_v46 = vadd.f32 1.0, %v2494_v45 }
 0x3d1   :  { %2495 = vrcp.f32 %v317_v46 }
 0x3db   :  { %v2496_v47 = vpop.eup %2495 }
 0x3dc   :  { %v320_v48 = vmul.f32 2.0, %v2496_v47  ;;  %v322_v52 = vmul.f32 %v2496_v47, %v230_v35 }
 0x3de   :  { %v2139_v49 = vadd.f32 -1.0, %v320_v48 }
 0x3e0   :  { %324 = vrot.lane.b32.xlu0 %v2139_v49, %s2689_s0 }
 0x452   :  { %v325_v50 = vpop.permute.xlu0 %324 }
 0x453   :  { %v327_v51 = vmul.f32 %v2496_v47, %v325_v50 }
 0x455   :  { %329 = vrot.lane.b32.xlu1 %v327_v51, %s2690_s3 }
 0x4c7   :  { %v330_v53 = vpop.permute.xlu1 %329 }
 0x4c8   :  { %v332_v54 = vadd.f32 %v330_v53, %v322_v52 }
 0x4ca   :  { %2497 = vtanh.f32 %v332_v54 }
 0x4d4   :  { %v2498_v55 = vpop.eup %2497 }
 0x4d5   :  { %335 = vrot.lane.b32.xlu0 %v2498_v55, %s2690_s3 }
 0x547   :  { %v336_v56 = vpop.permute.xlu0 %335 }
 0x548   :  { %v338_v57 = vmul.f32 %v2496_v47, %v336_v56  ;;  %v645_v56 = vld [vmem:[#allocation2 + $0x5] sm:$0x1] }
 0x54a   :  { %341 = vrot.lane.b32.xlu1 %v338_v57, %s2691_s18 }
 0x5bc   :  { %v342_v58 = vpop.permute.xlu1 %341 }
 0x5bd   :  { %2304 = vmatmul.mubr.msk.f32.vlgmr.msra.gmra.mrb[4].mxu1 %vm133_vm6, %v342_v58 }
 0x5be   :  { %2439 = vmatpush3.bf16.msk.msra.mxu1 %vm2799_vm3, %v2810_v13  ;;  %2310 = vmatprep.mubr.msk.f32.mxu1 %vm2686_vm0, %v2687_v6 }
 0x5bf   :  { %2444 = vmatprep.subr.bf16.mxu1 %v2685_v3 }
 0x690   :  { %v411_v60 = vpop.f32.mrb[4].mxu1 }
 0x691   :  { %v415_v61 = vadd.f32 %v411_v60, %v339_v59  ;;  %v2305_v62 = vpop.f32.mrb[5].mxu1 }
 0x693   :  { %v2142_v63 = vmul.f32 -1.442695, %v415_v61 }
 0x695   :  { %2499 = vpow2.f32 %v2142_v63 }
 0x69f   :  { %v2500_v0 = vpop.eup %2499 }
 0x6a0   :  { %v419_v1 = vadd.f32 1.0, %v2500_v0 }
 0x6a2   :  { %2501 = vrcp.f32 %v419_v1 }
 0x6ac   :  { %v2502_v2 = vpop.eup %2501 }
 0x6ad   :  { %v422_v4 = vmul.f32 2.0, %v2502_v2  ;;  %v424_v9 = vmul.f32 %v2502_v2, %v332_v54 }
 0x6af   :  { %v2143_v5 = vadd.f32 -1.0, %v422_v4 }
 0x6b1   :  { %426 = vrot.lane.b32.xlu0 %v2143_v5, %s2689_s0 }
 0x723   :  { %v427_v7 = vpop.permute.xlu0 %426 }
 0x724   :  { %v429_v8 = vmul.f32 %v2502_v2, %v427_v7 }
 0x726   :  { %431 = vrot.lane.b32.xlu1 %v429_v8, %s2690_s3 }
 0x798   :  { %v432_v11 = vpop.permute.xlu1 %431 }
 0x799   :  { %v434_v12 = vadd.f32 %v432_v11, %v424_v9 }
 0x79b   :  { %2503 = vtanh.f32 %v434_v12 }
 0x7a5   :  { %v2504_v14 = vpop.eup %2503 }
 0x7a6   :  { %437 = vrot.lane.b32.xlu0 %v2504_v14, %s2690_s3  ;;  %v747_v14 = vld [vmem:[#allocation2 + $0x6] sm:$0x1] }
 0x818   :  { %v438_v15 = vpop.permute.xlu0 %437 }
 0x819   :  { %v440_v16 = vmul.f32 %v2502_v2, %v438_v15 }
 0x81b   :  { %443 = vrot.lane.b32.xlu1 %v440_v16, %s2691_s18 }
 0x88d   :  { %v444_v17 = vpop.permute.xlu1 %443 }
 0x88e   :  { %2311 = vmatmul.mubr.msk.f32.vlgmr.msra.gmra.mrb[6].mxu1 %vm133_vm6, %v444_v17 }
 0x88f   :  { %2447 = vmatpush3.bf16.msk.msra.mxu1 %vm2799_vm3, %v2810_v13  ;;  %2324 = vmatprep.mubr.msk.f32.mxu1 %vm2686_vm0, %v2687_v6 }
 0x890   :  { %2452 = vmatprep.subr.bf16.mxu1 %v2685_v3 }
 0x961   :  { %v513_v19 = vpop.f32.mrb[6].mxu1 }
 0x962   :  { %v517_v20 = vadd.f32 %v513_v19, %v441_v18  ;;  %v2312_v21 = vpop.f32.mrb[7].mxu1 }
 0x964   :  { %v2146_v22 = vmul.f32 -1.442695, %v517_v20 }
 0x966   :  { %2505 = vpow2.f32 %v2146_v22 }
 0x970   :  { %v2506_v23 = vpop.eup %2505 }
 0x971   :  { %v521_v24 = vadd.f32 1.0, %v2506_v23 }
 0x973   :  { %2507 = vrcp.f32 %v521_v24 }
 0x97d   :  { %v2508_v25 = vpop.eup %2507 }
 0x97e   :  { %v524_v26 = vmul.f32 2.0, %v2508_v25  ;;  %v526_v30 = vmul.f32 %v2508_v25, %v434_v12 }
 0x980   :  { %v2147_v27 = vadd.f32 -1.0, %v524_v26 }
 0x982   :  { %528 = vrot.lane.b32.xlu0 %v2147_v27, %s2689_s0 }
 0x9f4   :  { %v529_v28 = vpop.permute.xlu0 %528 }
 0x9f5   :  { %v531_v29 = vmul.f32 %v2508_v25, %v529_v28 }
 0x9f7   :  { %533 = vrot.lane.b32.xlu1 %v531_v29, %s2690_s3 }
 0xa69   :  { %v534_v31 = vpop.permute.xlu1 %533 }
 0xa6a   :  { %v536_v32 = vadd.f32 %v534_v31, %v526_v30 }
 0xa6c   :  { %2509 = vtanh.f32 %v536_v32 }
 0xa76   :  { %v2510_v33 = vpop.eup %2509 }
 0xa77   :  { %539 = vrot.lane.b32.xlu0 %v2510_v33, %s2690_s3  ;;  %v849_v33 = vld [vmem:[#allocation2 + $0x7] sm:$0x1] }
 0xae9   :  { %v540_v34 = vpop.permute.xlu0 %539 }
 0xaea   :  { %v542_v35 = vmul.f32 %v2508_v25, %v540_v34 }
 0xaec   :  { %545 = vrot.lane.b32.xlu1 %v542_v35, %s2691_s18 }
 0xb5e   :  { %v546_v36 = vpop.permute.xlu1 %545 }
 0xb5f   :  { %2318 = vmatmul.mubr.msk.f32.vlgmr.msra.gmra.mrb[2].mxu0 %vm133_vm6, %v546_v36 }
 0xb60   :  { %2451 = vmatpush3.bf16.msk.msra.mxu0 %vm2799_vm3, %v2810_v13  ;;  %2331 = vmatprep.mubr.msk.f32.mxu0 %vm2686_vm0, %v2687_v6 }
 0xb61   :  { %2456 = vmatprep.subr.bf16.mxu0 %v2685_v3 }
 0xc32   :  { %v615_v38 = vpop.f32.mrb[2].mxu0 }
 0xc33   :  { %v619_v39 = vadd.f32 %v615_v38, %v543_v37  ;;  %v2319_v40 = vpop.f32.mrb[3].mxu0 }
 0xc35   :  { %v2150_v41 = vmul.f32 -1.442695, %v619_v39 }
 0xc37   :  { %2511 = vpow2.f32 %v2150_v41 }
 0xc41   :  { %v2512_v42 = vpop.eup %2511 }
 0xc42   :  { %v623_v43 = vadd.f32 1.0, %v2512_v42 }
 0xc44   :  { %2513 = vrcp.f32 %v623_v43 }
 0xc4e   :  { %v2514_v44 = vpop.eup %2513 }
 0xc4f   :  { %v626_v45 = vmul.f32 2.0, %v2514_v44  ;;  %v628_v49 = vmul.f32 %v2514_v44, %v536_v32 }
 0xc51   :  { %v2151_v46 = vadd.f32 -1.0, %v626_v45 }
 0xc53   :  { %630 = vrot.lane.b32.xlu0 %v2151_v46, %s2689_s0 }
 0xcc5   :  { %v631_v47 = vpop.permute.xlu0 %630 }
 0xcc6   :  { %v633_v48 = vmul.f32 %v2514_v44, %v631_v47 }
 0xcc8   :  { %635 = vrot.lane.b32.xlu1 %v633_v48, %s2690_s3  ;;  %v951_v48 = vld [vmem:[%s3130_s5] sm:$0xff] }
 0xd3a   :  { %v636_v50 = vpop.permute.xlu1 %635 }
 0xd3b   :  { %v638_v51 = vadd.f32 %v636_v50, %v628_v49  ;;  %v952_v49 = vld [vmem:[%s3130_s5 + $0x8] sm:$0xf] }
 0xd3c   :  { %v2457_v50 = vpack.c.bf16 %v952_v49, %v951_v48 }
 0xd3d   :  { %2515 = vtanh.f32 %v638_v51 }
 0xd47   :  { %v2516_v52 = vpop.eup %2515 }
 0xd48   :  { %641 = vrot.lane.b32.xlu0 %v2516_v52, %s2690_s3  ;;  %v2166_v52 = vld [vmem:[%s3127_s2] ss:$0 sm:$0xff] }
 0xdba   :  { %v642_v53 = vpop.permute.xlu0 %641 }
 0xdbb   :  { %v644_v54 = vmul.f32 %v2514_v44, %v642_v53 }
 0xdbd   :  { %647 = vrot.lane.b32.xlu1 %v644_v54, %s2691_s18 }
 0xe2f   :  { %v648_v55 = vpop.permute.xlu1 %647 }
 0xe30   :  { %2325 = vmatmul.mubr.msk.f32.vlgmr.msra.gmra.mrb[8].mxu1 %vm133_vm6, %v648_v55 }
 0xe31   :  { %2455 = vmatpush3.bf16.msk.msra.mxu1 %vm2799_vm3, %v2810_v13  ;;  %2338 = vmatprep.mubr.msk.f32.mxu1 %vm2686_vm0, %v2687_v6 }
 0xe32   :  { %2460 = vmatprep.subr.bf16.mxu1 %v2685_v3 }
 0xf03   :  { %v717_v57 = vpop.f32.mrb[8].mxu1 }
 0xf04   :  { %v721_v58 = vadd.f32 %v717_v57, %v645_v56  ;;  %v2326_v59 = vpop.f32.mrb[9].mxu1  ;;  %v1060_v56 = vld [vmem:[%s3132_s7 + $0x8] sm:$0xff]  ;;  %v1061_v57 = vld [vmem:[%s3132_s7 + $0x10] sm:$0xff] }
 0xf05   :  { %v1062_v59 = vld [vmem:[%s3132_s7 + $0x18] sm:$0xff] }
 0xf06   :  { %v2154_v60 = vmul.f32 -1.442695, %v721_v58  ;;  %v2461_v58 = vpack.c.bf16 %v1060_v56, %v1059_v10 }
 0xf08   :  { %2517 = vpow2.f32 %v2154_v60  ;;  %v2464_v60 = vpack.c.bf16 %v1062_v59, %v1061_v57 }
 0xf12   :  { %v2518_v61 = vpop.eup %2517 }
 0xf13   :  { %v725_v62 = vadd.f32 1.0, %v2518_v61  ;;  %v1063_v61 = vld [vmem:[%s3132_s7 + $0x20] sm:$0xff] }
 0xf15   :  { %2519 = vrcp.f32 %v725_v62  ;;  %v1064_v62 = vld [vmem:[%s3132_s7 + $0x28] sm:$0xff] }
 0xf1f   :  { %v2520_v63 = vpop.eup %2519 }
 0xf20   :  { %v728_v0 = vmul.f32 2.0, %v2520_v63  ;;  %v730_v4 = vmul.f32 %v2520_v63, %v638_v51 }
 0xf22   :  { %v2155_v1 = vadd.f32 -1.0, %v728_v0  ;;  %v953_v0 = vld [vmem:[%s3131_s6] sm:$0x1] }
 0xf24   :  { %732 = vrot.lane.b32.xlu0 %v2155_v1, %s2689_s0 }
 0xf96   :  { %v733_v13 = vpop.permute.xlu0 %732 }
 0xf97   :  { %v735_v2 = vmul.f32 %v2520_v63, %v733_v13 }
 0xf99   :  { %737 = vrot.lane.b32.xlu1 %v735_v2, %s2690_s3 }
0x100b   :  { %v738_v5 = vpop.permute.xlu1 %737 }
0x100c   :  { %v740_v7 = vadd.f32 %v738_v5, %v730_v4 }
0x100e   :  { %2521 = vtanh.f32 %v740_v7 }
0x1018   :  { %v2522_v8 = vpop.eup %2521 }
0x1019   :  { %743 = vrot.lane.b32.xlu0 %v2522_v8, %s2690_s3 }
0x108b   :  { %v744_v9 = vpop.permute.xlu0 %743 }
0x108c   :  { %v746_v11 = vmul.f32 %v2520_v63, %v744_v9  ;;  %v2467_v63 = vpack.c.bf16 %v1064_v62, %v1063_v61  ;;  %v2969_v9 = vld [vmem:[%s3133_s8] sm:$0x3f]  ;;  %s2695_s8 = smov 116  }
0x108e   :  { %749 = vrot.lane.b32.xlu1 %v746_v11, %s2691_s18  ;;  %v1058_v11 = vld [vmem:[%s3126_s1] sm:$0xff]  ;;  %s2693_s1 = smov 122  }
0x1100   :  { %v750_v12 = vpop.permute.xlu1 %749 }
0x1101   :  { %2332 = vmatmul.mubr.msk.f32.vlgmr.msra.gmra.mrb[4].mxu0 %vm133_vm6, %v750_v12 }
0x1102   :  { %2345 = vmatprep.mubr.msk.f32.mxu0 %vm2686_vm0, %v2687_v6  ;;  %2459 = vmatpush3.bf16.msk.msra.mxu0 %vm2799_vm3, %v2457_v50 }
0x1103   :  { %2367 = vmatprep.subr.mxu0 %v2687_v6 }
0x11d4   :  { %v819_v15 = vpop.f32.mrb[4].mxu0 }
0x11d5   :  { %v823_v16 = vadd.f32 %v819_v15, %v747_v14  ;;  %v2333_v17 = vpop.f32.mrb[5].mxu0 }
0x11d7   :  { %v2158_v18 = vmul.f32 -1.442695, %v823_v16 }
0x11d9   :  { %2523 = vpow2.f32 %v2158_v18 }
0x11e3   :  { %v2524_v19 = vpop.eup %2523 }
0x11e4   :  { %v827_v20 = vadd.f32 1.0, %v2524_v19 }
0x11e6   :  { %2525 = vrcp.f32 %v827_v20 }
0x11f0   :  { %v2526_v21 = vpop.eup %2525 }
0x11f1   :  { %v830_v22 = vmul.f32 2.0, %v2526_v21  ;;  %v832_v26 = vmul.f32 %v2526_v21, %v740_v7  ;;  %v1066_v7 = vld [vmem:[%s3132_s7 + $0x38] sm:$0xff] }
0x11f3   :  { %v2159_v23 = vadd.f32 -1.0, %v830_v22 }
0x11f5   :  { %834 = vrot.lane.b32.xlu0 %v2159_v23, %s2689_s0 }
0x1267   :  { %v835_v24 = vpop.permute.xlu0 %834 }
0x1268   :  { %v837_v25 = vmul.f32 %v2526_v21, %v835_v24 }
0x126a   :  { %839 = vrot.lane.b32.xlu1 %v837_v25, %s2690_s3 }
0x12dc   :  { %v840_v27 = vpop.permute.xlu1 %839 }
0x12dd   :  { %v842_v28 = vadd.f32 %v840_v27, %v832_v26 }
0x12df   :  { %2527 = vtanh.f32 %v842_v28 }
0x12e9   :  { %v2528_v29 = vpop.eup %2527 }
0x12ea   :  { %845 = vrot.lane.b32.xlu0 %v2528_v29, %s2690_s3 }
0x135c   :  { %v846_v30 = vpop.permute.xlu0 %845 }
0x135d   :  { %v848_v31 = vmul.f32 %v2526_v21, %v846_v30 }
0x135f   :  { %851 = vrot.lane.b32.xlu1 %v848_v31, %s2691_s18 }
0x13d1   :  { %v852_v32 = vpop.permute.xlu1 %851 }
0x13d2   :  { %2339 = vmatmul.mubr.msk.f32.vlgmr.msra.gmra.mrb[10].mxu1 %vm133_vm6, %v852_v32 }
0x13d3   :  { %2364 = vmatprep.mubr.msk.f32.mxu1 %vm2686_vm0, %v2687_v6  ;;  %2462 = vmatpush3.bf16.msra.mxu1 %v2461_v58 }
0x13d4   :  { %2463 = vmatprep.subr.bf16.mxu1 %v2685_v3 }
0x13d7   :  { %2465 = vmatpush3.bf16.msra.mxu1 %v2464_v60 }
0x13d8   :  { %2466 = vmatprep.subr.bf16.mxu1 %v2685_v3 }
0x13db   :  { %2468 = vmatpush3.bf16.msra.mxu1 %v2467_v63 }
0x13dc   :  { %2469 = vmatprep.subr.bf16.mxu1 %v2685_v3  ;;  %v1065_v3 = vld [vmem:[%s3132_s7 + $0x30] sm:$0xff]  ;;  %s2694_s7 = smov 110  }
0x13dd   :  { %v2470_v8 = vpack.c.bf16 %v1066_v7, %v1065_v3 }
0x13df   :  { %2471 = vmatpush3.bf16.msra.mxu1 %v2470_v8 }
0x13e0   :  { %2387 = vmatprep.subr.mxu1 %v2687_v6 }
0x13e2   :  { %2365 = vmatmul.mubr.msk.f32.vlgmr.msra.gmra.mrb[12].mxu1 %vm54_vm4, %v1058_v11 }
0x13e3   :  { %2388 = vmatpush3.msk.msra.mxu1 %vm1149_vm8, %v2969_v9  ;;  %2389 = vmatprep.mubr.msk.f32.mxu1 %vm2686_vm0, %v2687_v6 }
0x13e4   :  { %2397 = vmatprep.subr.mxu1 %v2687_v6 }
0x14a5   :  { %v921_v34 = vpop.f32.mrb[10].mxu1 }
0x14a6   :  { %v925_v35 = vadd.f32 %v921_v34, %v849_v33  ;;  %v2340_v36 = vpop.f32.mrb[11].mxu1 }
0x14a8   :  { %v2162_v37 = vmul.f32 -1.442695, %v925_v35 }
0x14aa   :  { %2529 = vpow2.f32 %v2162_v37 }
0x14b4   :  { %v2530_v38 = vpop.eup %2529 }
0x14b5   :  { %v929_v39 = vadd.f32 1.0, %v2530_v38  ;;  %v1136_v19 = vpop.f32.mrb[12].mxu1 }
0x14b6   :  { %1141 = vst.msk [vmem:[#allocation3] sm:$0xff] %vm1140_vm10, %v1136_v19  ;;  %v2366_v20 = vpop.f32.mrb[13].mxu1 }
0x14b7   :  { %2531 = vrcp.f32 %v929_v39 }
0x14bd   :  { %v1144_v21 = vld [vmem:[#allocation3] sm:$0x1]  ;;  %v1358_v58 = vld [vmem:[#allocation3 + $0x2] sm:$0x1] }
0x14c1   :  { %v2532_v40 = vpop.eup %2531 }
0x14c2   :  { %v932_v41 = vmul.f32 2.0, %v2532_v40  ;;  %v934_v45 = vmul.f32 %v2532_v40, %v842_v28 }
0x14c4   :  { %v2163_v42 = vadd.f32 -1.0, %v932_v41 }
0x14c6   :  { %936 = vrot.lane.b32.xlu0 %v2163_v42, %s2689_s0 }
0x1538   :  { %v937_v43 = vpop.permute.xlu0 %936 }
0x1539   :  { %v939_v44 = vmul.f32 %v2532_v40, %v937_v43 }
0x153b   :  { %941 = vrot.lane.b32.xlu1 %v939_v44, %s2690_s3 }
0x15ad   :  { %v942_v46 = vpop.permute.xlu1 %941 }
0x15ae   :  { %v944_v47 = vadd.f32 %v942_v46, %v934_v45 }
0x15b0   :  { %2533 = vtanh.f32 %v944_v47 }
0x15ba   :  { %v2534_v51 = vpop.eup %2533 }
0x15bb   :  { %947 = vrot.lane.b32.xlu0 %v2534_v51, %s2690_s3 }
0x15bf   :  { %1041 = vrot.lane.b32.xlu0 %v2166_v52, %s2692_s25 }
0x162d   :  { %v948_v53 = vpop.permute.xlu0 %947 }
0x162e   :  { %v950_v54 = vmul.f32 %v2532_v40, %v948_v53  ;;  %v1254_v40 = vld [vmem:[#allocation3 + $0x1] sm:$0x1] }
0x1630   :  { %955 = vrot.lane.b32.xlu1 %v950_v54, %s2691_s18 }
0x1631   :  { %v1042_v12 = vpop.permute.xlu0 %1041 }
0x16a2   :  { %v956_v55 = vpop.permute.xlu1 %955 }
0x16a3   :  { %2346 = vmatmul.mubr.msk.f32.vlgmr.msra.gmra.mrb[6].mxu0 %vm133_vm6, %v956_v55 }
0x16a4   :  { %2369 = vmatprep.mubr.msk.f32.mxu0 %vm2686_vm0, %v2687_v6  ;;  %2368 = vmatpush3.msk.msra.mxu0 %vm1149_vm8, %v2969_v9 }
0x16a5   :  { %2372 = vmatprep.subr.mxu0 %v2687_v6 }
0x1776   :  { %v1028_v1 = vpop.f32.mrb[6].mxu0 }
0x1777   :  { %v2955_v13 = vadd.f32 %v1028_v1, %v953_v0  ;;  %v2347_v2 = vpop.f32.mrb[7].mxu0 }
0x1779   :  { %v1032_v4 = vmul.f32 0.5, %v2955_v13  ;;  %1051 = vst.msk [vmem:[#allocation7] sm:$0x1] %vm1050_vm7, %v2955_v13 }
0x177b   :  { %v1033_v5 = vmul.f32 1.442695, %v1032_v4 }
0x177d   :  { %2535 = vpow2.f32 %v1033_v5 }
0x1787   :  { %v2536_v14 = vpop.eup %2535 }
0x1788   :  { %v1044_v15 = vmul.f32 %v2536_v14, %v1042_v12 }
0x178a   :  { %1046 = vrot.lane.b32.xlu1 %v1044_v15, %s2693_s1 }
0x17fc   :  { %v1047_v16 = vpop.permute.xlu1 %1046 }
0x17fd   :  { %v1049_v17 = vadd.f32 %v1047_v16, %v2955_v13 }
0x17ff   :  { %2537 = vtanh.f32 %v1049_v17  ;;  %1057 = vst.msk [vmem:[#allocation10] sm:$0x1] %vm1050_vm7, %v1049_v17  ;;  %v1462_v17 = vld [vmem:[#allocation3 + $0x3] sm:$0x1] }
0x1809   :  { %v2538_v18 = vpop.eup %2537 }
0x180a   :  { %2370 = vmatmul.mubr.msk.f32.vlgmr.msra.gmra.mrb[8].mxu0 %vm1145_vm9, %v2538_v18 }
0x180b   :  { %2373 = vmatpush3.msk.msra.mxu0 %vm1149_vm8, %v2969_v9  ;;  %2374 = vmatprep.mubr.msk.f32.mxu0 %vm2686_vm0, %v2687_v6 }
0x180c   :  { %2377 = vmatprep.subr.mxu0 %v2687_v6 }
0x18dd   :  { %v1219_v22 = vpop.f32.mrb[8].mxu0 }
0x18de   :  { %v1223_v23 = vadd.f32 %v1219_v22, %v1144_v21  ;;  %v2371_v24 = vpop.f32.mrb[9].mxu0 }
0x18e0   :  { %v2170_v25 = vmul.f32 -1.442695, %v1223_v23 }
0x18e2   :  { %2539 = vpow2.f32 %v2170_v25 }
0x18ec   :  { %v2540_v26 = vpop.eup %2539 }
0x18ed   :  { %v1227_v27 = vadd.f32 1.0, %v2540_v26 }
0x18ef   :  { %2541 = vrcp.f32 %v1227_v27 }
0x18f9   :  { %v2542_v28 = vpop.eup %2541 }
0x18fa   :  { %v1230_v29 = vmul.f32 2.0, %v2542_v28  ;;  %v1232_v33 = vmul.f32 0.0, %v2542_v28 }
0x18fc   :  { %v2171_v30 = vadd.f32 -1.0, %v1230_v29 }
0x18fe   :  { %1234 = vrot.lane.b32.xlu0 %v2171_v30, %s2694_s7 }
0x1970   :  { %v1235_v31 = vpop.permute.xlu0 %1234 }
0x1971   :  { %v1237_v32 = vmul.f32 %v2542_v28, %v1235_v31 }
0x1973   :  { %1239 = vrot.lane.b32.xlu1 %v1237_v32, %s2692_s25 }
0x19e5   :  { %v1240_v34 = vpop.permute.xlu1 %1239 }
0x19e6   :  { %v1242_v35 = vadd.f32 %v1240_v34, %v1232_v33 }
0x19e8   :  { %2543 = vtanh.f32 %v1242_v35 }
0x19f2   :  { %v2544_v36 = vpop.eup %2543 }
0x19f3   :  { %1245 = vrot.lane.b32.xlu0 %v2544_v36, %s2692_s25  ;;  %v1566_v36 = vld [vmem:[#allocation3 + $0x4] sm:$0x1] }
0x1a65   :  { %v1246_v37 = vpop.permute.xlu0 %1245 }
0x1a66   :  { %v1248_v38 = vmul.f32 %v2542_v28, %v1246_v37 }
0x1a68   :  { %1250 = vrot.lane.b32.xlu1 %v1248_v38, %s2695_s8 }
0x1ada   :  { %v1251_v39 = vpop.permute.xlu1 %1250 }
0x1adb   :  { %1253 = vst.msk [vmem:[#allocation4] sm:$0x1] %vm1050_vm7, %v1251_v39  ;;  %2375 = vmatmul.mubr.msk.f32.vlgmr.msra.gmra.mrb[10].mxu0 %vm1145_vm9, %v1251_v39 }
0x1adc   :  { %2378 = vmatpush3.msk.msra.mxu0 %vm1149_vm8, %v2969_v9  ;;  %2379 = vmatprep.mubr.msk.f32.mxu0 %vm2686_vm0, %v2687_v6 }
0x1add   :  { %2382 = vmatprep.subr.mxu0 %v2687_v6 }
0x1bae   :  { %v1323_v41 = vpop.f32.mrb[10].mxu0 }
0x1baf   :  { %v1327_v42 = vadd.f32 %v1323_v41, %v1254_v40  ;;  %v2376_v43 = vpop.f32.mrb[11].mxu0 }
0x1bb1   :  { %v2174_v44 = vmul.f32 -1.442695, %v1327_v42 }
0x1bb3   :  { %2545 = vpow2.f32 %v2174_v44 }
0x1bbd   :  { %v2546_v45 = vpop.eup %2545 }
0x1bbe   :  { %v1331_v46 = vadd.f32 1.0, %v2546_v45 }
0x1bc0   :  { %2547 = vrcp.f32 %v1331_v46 }
0x1bca   :  { %v2548_v47 = vpop.eup %2547 }
0x1bcb   :  { %v1334_v48 = vmul.f32 2.0, %v2548_v47  ;;  %v1336_v52 = vmul.f32 %v2548_v47, %v1242_v35 }
0x1bcd   :  { %v2175_v49 = vadd.f32 -1.0, %v1334_v48 }
0x1bcf   :  { %1338 = vrot.lane.b32.xlu0 %v2175_v49, %s2694_s7 }
0x1c41   :  { %v1339_v50 = vpop.permute.xlu0 %1338 }
0x1c42   :  { %v1341_v51 = vmul.f32 %v2548_v47, %v1339_v50 }
0x1c44   :  { %1343 = vrot.lane.b32.xlu1 %v1341_v51, %s2692_s25 }
0x1cb6   :  { %v1344_v53 = vpop.permute.xlu1 %1343 }
0x1cb7   :  { %v1346_v54 = vadd.f32 %v1344_v53, %v1336_v52 }
0x1cb9   :  { %2549 = vtanh.f32 %v1346_v54 }
0x1cc3   :  { %v2550_v55 = vpop.eup %2549 }
0x1cc4   :  { %1349 = vrot.lane.b32.xlu0 %v2550_v55, %s2692_s25  ;;  %v1670_v55 = vld [vmem:[#allocation3 + $0x5] sm:$0x1] }
0x1d36   :  { %v1350_v10 = vpop.permute.xlu0 %1349 }
0x1d37   :  { %v1352_v56 = vmul.f32 %v2548_v47, %v1350_v10 }
0x1d39   :  { %1354 = vrot.lane.b32.xlu1 %v1352_v56, %s2695_s8 }
0x1dab   :  { %v1355_v57 = vpop.permute.xlu1 %1354 }
0x1dac   :  { %1357 = vst.msk [vmem:[#allocation4 + $0x1] sm:$0x1] %vm1050_vm7, %v1355_v57  ;;  %2380 = vmatmul.mubr.msk.f32.vlgmr.msra.gmra.mrb[12].mxu0 %vm1145_vm9, %v1355_v57 }
0x1dad   :  { %2383 = vmatpush3.msk.msra.mxu0 %vm1149_vm8, %v2969_v9  ;;  %2384 = vmatprep.mubr.msk.f32.mxu0 %vm2686_vm0, %v2687_v6 }
0x1dae   :  { %2392 = vmatprep.subr.mxu0 %v2687_v6 }
0x1e7f   :  { %v1427_v59 = vpop.f32.mrb[12].mxu0 }
0x1e80   :  { %v1431_v60 = vadd.f32 %v1427_v59, %v1358_v58  ;;  %v2381_v61 = vpop.f32.mrb[13].mxu0 }
0x1e82   :  { %v2178_v62 = vmul.f32 -1.442695, %v1431_v60 }
0x1e84   :  { %2551 = vpow2.f32 %v2178_v62 }
0x1e8e   :  { %v2552_v63 = vpop.eup %2551 }
0x1e8f   :  { %v1435_v0 = vadd.f32 1.0, %v2552_v63 }
0x1e91   :  { %2553 = vrcp.f32 %v1435_v0 }
0x1e9b   :  { %v2554_v1 = vpop.eup %2553 }
0x1e9c   :  { %v1438_v2 = vmul.f32 2.0, %v2554_v1  ;;  %v1440_v7 = vmul.f32 %v2554_v1, %v1346_v54 }
0x1e9e   :  { %v2179_v4 = vadd.f32 -1.0, %v1438_v2 }
0x1ea0   :  { %1442 = vrot.lane.b32.xlu0 %v2179_v4, %s2694_s7 }
0x1f12   :  { %v1443_v5 = vpop.permute.xlu0 %1442 }
0x1f13   :  { %v1445_v3 = vmul.f32 %v2554_v1, %v1443_v5 }
0x1f15   :  { %1447 = vrot.lane.b32.xlu1 %v1445_v3, %s2692_s25 }
0x1f87   :  { %v1448_v8 = vpop.permute.xlu1 %1447 }
0x1f88   :  { %v1450_v11 = vadd.f32 %v1448_v8, %v1440_v7 }
0x1f8a   :  { %2555 = vtanh.f32 %v1450_v11 }
0x1f94   :  { %v2556_v12 = vpop.eup %2555 }
0x1f95   :  { %1453 = vrot.lane.b32.xlu0 %v2556_v12, %s2692_s25 }
0x2007   :  { %v1454_v14 = vpop.permute.xlu0 %1453 }
0x2008   :  { %v1456_v15 = vmul.f32 %v2554_v1, %v1454_v14 }
0x200a   :  { %1458 = vrot.lane.b32.xlu1 %v1456_v15, %s2695_s8 }
0x207c   :  { %v1459_v16 = vpop.permute.xlu1 %1458 }
0x207d   :  { %1461 = vst.msk [vmem:[#allocation4 + $0x2] sm:$0x1] %vm1050_vm7, %v1459_v16  ;;  %2385 = vmatmul.mubr.msk.f32.vlgmr.msra.gmra.mrb[14].mxu0 %vm1145_vm9, %v1459_v16 }
0x207e   :  { %2393 = vmatpush3.msk.msra.mxu0 %vm1149_vm8, %v2969_v9  ;;  %2394 = vmatprep.mubr.msk.f32.mxu0 %vm2686_vm0, %v2687_v6 }
0x207f   :  { %2402 = vmatprep.subr.mxu0 %v2687_v6 }
0x2150   :  { %v1531_v18 = vpop.f32.mrb[14].mxu0 }
0x2151   :  { %v1535_v19 = vadd.f32 %v1531_v18, %v1462_v17  ;;  %v2386_v20 = vpop.f32.mrb[15].mxu0 }
0x2153   :  { %v2182_v21 = vmul.f32 -1.442695, %v1535_v19 }
0x2155   :  { %2557 = vpow2.f32 %v2182_v21 }
0x215f   :  { %v2558_v22 = vpop.eup %2557 }
0x2160   :  { %v1539_v23 = vadd.f32 1.0, %v2558_v22 }
0x2162   :  { %2559 = vrcp.f32 %v1539_v23 }
0x216c   :  { %v2560_v24 = vpop.eup %2559 }
0x216d   :  { %v1542_v25 = vmul.f32 2.0, %v2560_v24  ;;  %v1544_v29 = vmul.f32 %v2560_v24, %v1450_v11  ;;  %v1774_v11 = vld [vmem:[#allocation3 + $0x6] sm:$0x1] }
0x216f   :  { %v2183_v26 = vadd.f32 -1.0, %v1542_v25 }
0x2171   :  { %1546 = vrot.lane.b32.xlu0 %v2183_v26, %s2694_s7 }
0x21e3   :  { %v1547_v27 = vpop.permute.xlu0 %1546 }
0x21e4   :  { %v1549_v28 = vmul.f32 %v2560_v24, %v1547_v27 }
0x21e6   :  { %1551 = vrot.lane.b32.xlu1 %v1549_v28, %s2692_s25 }
0x2258   :  { %v1552_v30 = vpop.permute.xlu1 %1551 }
0x2259   :  { %v1554_v31 = vadd.f32 %v1552_v30, %v1544_v29  ;;  %v1878_v30 = vld [vmem:[#allocation3 + $0x7] sm:$0x1] }
0x225b   :  { %2561 = vtanh.f32 %v1554_v31 }
0x2265   :  { %v2562_v32 = vpop.eup %2561 }
0x2266   :  { %1557 = vrot.lane.b32.xlu0 %v2562_v32, %s2692_s25 }
0x22d8   :  { %v1558_v33 = vpop.permute.xlu0 %1557 }
0x22d9   :  { %v1560_v34 = vmul.f32 %v2560_v24, %v1558_v33 }
0x22db   :  { %1562 = vrot.lane.b32.xlu1 %v1560_v34, %s2695_s8 }
0x234d   :  { %v1563_v35 = vpop.permute.xlu1 %1562 }
0x234e   :  { %1565 = vst.msk [vmem:[#allocation4 + $0x3] sm:$0x1] %vm1050_vm7, %v1563_v35  ;;  %2390 = vmatmul.mubr.msk.f32.vlgmr.msra.gmra.mrb[14].mxu1 %vm1145_vm9, %v1563_v35 }
0x234f   :  { %2398 = vmatpush3.msk.msra.mxu1 %vm1149_vm8, %v2969_v9  ;;  %2399 = vmatprep.mubr.msk.f32.mxu1 %vm2686_vm0, %v2687_v6 }
0x2350   :  { %2407 = vmatprep.subr.mxu1 %v2687_v6 }
0x2421   :  { %v1635_v37 = vpop.f32.mrb[14].mxu1 }
0x2422   :  { %v1639_v38 = vadd.f32 %v1635_v37, %v1566_v36  ;;  %v2391_v39 = vpop.f32.mrb[15].mxu1 }
0x2424   :  { %v2186_v40 = vmul.f32 -1.442695, %v1639_v38 }
0x2426   :  { %2563 = vpow2.f32 %v2186_v40 }
0x2430   :  { %v2564_v41 = vpop.eup %2563 }
0x2431   :  { %v1643_v42 = vadd.f32 1.0, %v2564_v41 }
0x2433   :  { %2565 = vrcp.f32 %v1643_v42 }
0x243d   :  { %v2566_v43 = vpop.eup %2565 }
0x243e   :  { %v1646_v44 = vmul.f32 2.0, %v2566_v43  ;;  %v1648_v48 = vmul.f32 %v2566_v43, %v1554_v31 }
0x2440   :  { %v2187_v45 = vadd.f32 -1.0, %v1646_v44 }
0x2442   :  { %1650 = vrot.lane.b32.xlu0 %v2187_v45, %s2694_s7 }
0x24b4   :  { %v1651_v46 = vpop.permute.xlu0 %1650 }
0x24b5   :  { %v1653_v47 = vmul.f32 %v2566_v43, %v1651_v46  ;;  %v1983_v46 = vld [vmem:[%s3134_s9] sm:$0x3f]  ;;  %s2696_s9 = smov [#allocation7]  }
0x24b7   :  { %1655 = vrot.lane.b32.xlu1 %v1653_v47, %s2692_s25 }
0x2529   :  { %v1656_v49 = vpop.permute.xlu1 %1655 }
0x252a   :  { %v1658_v50 = vadd.f32 %v1656_v49, %v1648_v48 }
0x252c   :  { %2567 = vtanh.f32 %v1658_v50 }
0x2536   :  { %v2568_v51 = vpop.eup %2567 }
0x2537   :  { %1661 = vrot.lane.b32.xlu0 %v2568_v51, %s2692_s25  ;;  %v2200_v51 = vld [vmem:[%s3135_s10] ss:$0 sm:$0xff] }
0x25a9   :  { %v1662_v52 = vpop.permute.xlu0 %1661 }
0x25aa   :  { %v1664_v53 = vmul.f32 %v2566_v43, %v1662_v52 }
0x25ac   :  { %1666 = vrot.lane.b32.xlu1 %v1664_v53, %s2695_s8 }
0x261e   :  { %v1667_v54 = vpop.permute.xlu1 %1666 }
0x261f   :  { %1669 = vst.msk [vmem:[#allocation4 + $0x4] sm:$0x1] %vm1050_vm7, %v1667_v54  ;;  %2395 = vmatmul.mubr.msk.f32.vlgmr.msra.gmra.mrb[16].mxu0 %vm1145_vm9, %v1667_v54 }
0x2620   :  { %2403 = vmatpush3.msk.msra.mxu0 %vm1149_vm8, %v2969_v9  ;;  %2404 = vmatprep.mubr.msk.f32.mxu0 %vm2686_vm0, %v2687_v6 }
0x26f2   :  { %v1739_v10 = vpop.f32.mrb[16].mxu0 }
0x26f3   :  { %v1743_v56 = vadd.f32 %v1739_v10, %v1670_v55  ;;  %v2396_v57 = vpop.f32.mrb[17].mxu0 }
0x26f5   :  { %v2190_v58 = vmul.f32 -1.442695, %v1743_v56 }
0x26f7   :  { %2569 = vpow2.f32 %v2190_v58 }
0x2701   :  { %v2570_v59 = vpop.eup %2569 }
0x2702   :  { %v1747_v60 = vadd.f32 1.0, %v2570_v59 }
0x2704   :  { %2571 = vrcp.f32 %v1747_v60 }
0x270e   :  { %v2572_v61 = vpop.eup %2571 }
0x270f   :  { %v1750_v62 = vmul.f32 2.0, %v2572_v61  ;;  %v1752_v9 = vmul.f32 %v2572_v61, %v1658_v50 }
0x2711   :  { %v2191_v63 = vadd.f32 -1.0, %v1750_v62 }
0x2713   :  { %1754 = vrot.lane.b32.xlu0 %v2191_v63, %s2694_s7 }
0x2785   :  { %v1755_v0 = vpop.permute.xlu0 %1754 }
0x2786   :  { %v1757_v1 = vmul.f32 %v2572_v61, %v1755_v0 }
0x2788   :  { %1759 = vrot.lane.b32.xlu1 %v1757_v1, %s2692_s25 }
0x27fa   :  { %v1760_v2 = vpop.permute.xlu1 %1759 }
0x27fb   :  { %v1762_v4 = vadd.f32 %v1760_v2, %v1752_v9 }
0x27fd   :  { %2573 = vtanh.f32 %v1762_v4 }
0x2807   :  { %v2574_v5 = vpop.eup %2573 }
0x2808   :  { %1765 = vrot.lane.b32.xlu0 %v2574_v5, %s2692_s25 }
0x287a   :  { %v1766_v3 = vpop.permute.xlu0 %1765 }
0x287b   :  { %v1768_v7 = vmul.f32 %v2572_v61, %v1766_v3 }
0x287d   :  { %1770 = vrot.lane.b32.xlu1 %v1768_v7, %s2695_s8 }
0x28ef   :  { %v1771_v8 = vpop.permute.xlu1 %1770 }
0x28f0   :  { %1773 = vst.msk [vmem:[#allocation4 + $0x5] sm:$0x1] %vm1050_vm7, %v1771_v8  ;;  %2400 = vmatmul.mubr.msk.f32.vlgmr.msra.gmra.mrb[16].mxu1 %vm1145_vm9, %v1771_v8 }
0x28f1   :  { %2409 = vmatprep.mubr.msk.f32.mxu1 %vm2686_vm0, %v2687_v6  ;;  %2408 = vmatpush3.msk.msra.mxu1 %vm1149_vm8, %v1983_v46 }
0x29c3   :  { %v1843_v12 = vpop.f32.mrb[16].mxu1 }
0x29c4   :  { %v1847_v14 = vadd.f32 %v1843_v12, %v1774_v11  ;;  %v2401_v15 = vpop.f32.mrb[17].mxu1 }
0x29c6   :  { %v2194_v16 = vmul.f32 -1.442695, %v1847_v14 }
0x29c8   :  { %2575 = vpow2.f32 %v2194_v16 }
0x29d2   :  { %v2576_v17 = vpop.eup %2575 }
0x29d3   :  { %v1851_v18 = vadd.f32 1.0, %v2576_v17 }
0x29d5   :  { %2577 = vrcp.f32 %v1851_v18 }
0x29df   :  { %v2578_v19 = vpop.eup %2577 }
0x29e0   :  { %v1854_v20 = vmul.f32 2.0, %v2578_v19  ;;  %v1856_v24 = vmul.f32 %v2578_v19, %v1762_v4 }
0x29e2   :  { %v2195_v21 = vadd.f32 -1.0, %v1854_v20 }
0x29e4   :  { %1858 = vrot.lane.b32.xlu0 %v2195_v21, %s2694_s7 }
0x2a56   :  { %v1859_v22 = vpop.permute.xlu0 %1858 }
0x2a57   :  { %v1861_v23 = vmul.f32 %v2578_v19, %v1859_v22 }
0x2a59   :  { %1863 = vrot.lane.b32.xlu1 %v1861_v23, %s2692_s25 }
0x2acb   :  { %v1864_v6 = vpop.permute.xlu1 %1863 }
0x2acc   :  { %v1866_v25 = vadd.f32 %v1864_v6, %v1856_v24 }
0x2ace   :  { %2579 = vtanh.f32 %v1866_v25 }
0x2ad8   :  { %v2580_v26 = vpop.eup %2579 }
0x2ad9   :  { %1869 = vrot.lane.b32.xlu0 %v2580_v26, %s2692_s25 }
0x2b4b   :  { %v1870_v27 = vpop.permute.xlu0 %1869 }
0x2b4c   :  { %v1872_v28 = vmul.f32 %v2578_v19, %v1870_v27 }
0x2b4e   :  { %1874 = vrot.lane.b32.xlu1 %v1872_v28, %s2695_s8 }
0x2bc0   :  { %v1875_v29 = vpop.permute.xlu1 %1874 }
0x2bc1   :  { %1877 = vst.msk [vmem:[#allocation4 + $0x6] sm:$0x1] %vm1050_vm7, %v1875_v29  ;;  %2405 = vmatmul.mubr.msk.f32.vlgmr.msra.gmra.mrb[18].mxu0 %vm1145_vm9, %v1875_v29 }
0x2c94   :  { %v1947_v31 = vpop.f32.mrb[18].mxu0 }
0x2c95   :  { %v1951_v32 = vadd.f32 %v1947_v31, %v1878_v30  ;;  %v2406_v33 = vpop.f32.mrb[19].mxu0 }
0x2c97   :  { %v2198_v34 = vmul.f32 -1.442695, %v1951_v32 }
0x2c99   :  { %2581 = vpow2.f32 %v2198_v34 }
0x2ca3   :  { %v2582_v35 = vpop.eup %2581 }
0x2ca4   :  { %v1955_v36 = vadd.f32 1.0, %v2582_v35 }
0x2ca6   :  { %2583 = vrcp.f32 %v1955_v36 }
0x2cb0   :  { %v2584_v37 = vpop.eup %2583 }
0x2cb1   :  { %v1958_v38 = vmul.f32 2.0, %v2584_v37  ;;  %v1960_v42 = vmul.f32 %v2584_v37, %v1866_v25 }
0x2cb3   :  { %v2199_v39 = vadd.f32 -1.0, %v1958_v38 }
0x2cb5   :  { %1962 = vrot.lane.b32.xlu0 %v2199_v39, %s2694_s7 }
0x2d27   :  { %v1963_v40 = vpop.permute.xlu0 %1962 }
0x2d28   :  { %v1965_v41 = vmul.f32 %v2584_v37, %v1963_v40 }
0x2d2a   :  { %1967 = vrot.lane.b32.xlu1 %v1965_v41, %s2692_s25 }
0x2d9c   :  { %v1968_v43 = vpop.permute.xlu1 %1967 }
0x2d9d   :  { %v1970_v44 = vadd.f32 %v1968_v43, %v1960_v42 }
0x2d9f   :  { %2585 = vtanh.f32 %v1970_v44 }
0x2da9   :  { %v2586_v45 = vpop.eup %2585 }
0x2daa   :  { %1973 = vrot.lane.b32.xlu0 %v2586_v45, %s2692_s25  ;;  %s2093_s25 = sshll.u32 %s2696_s9, 4  ;;  %s2094_s25 = int_to_ptr.vmem [resolvable:$true] %s2093_s25 }
0x2dab   :  { %s2591_s10 = scalar_lea.vmem %s2094_s25, 16  ;;  %s2595_s4 = scalar_lea.vmem %s2094_s25, 32 }
0x2dac   :  { %p2592_p0 = scmp.ne.s32.totalorder %s2094_s25, %s2591_s10  ;;  %p2596_p1 = scmp.lt.s32.totalorder %s2094_s25, %s2094_s25 }
0x2dad   :  { %p2597_p2 = scmp.lt.s32.totalorder %s2595_s4, %s2591_s10 }
0x2daf   :  { %p2598_p3 = por %p2597_p2, %p2596_p1 }
0x2db1   :  { %p2599_p4 = pnand %p2598_p3, %p2592_p0 }
0x2e1c   :  { %v1974_v47 = vpop.permute.xlu0 %1973 }
0x2e1d   :  { %v1976_v48 = vmul.f32 %v2584_v37, %v1974_v47 }
0x2e1f   :  { %1978 = vrot.lane.b32.xlu1 %v1976_v48, %s2695_s8 }
0x2e91   :  { %v1979_v49 = vpop.permute.xlu1 %1978 }
0x2e92   :  { %1981 = vst.msk [vmem:[#allocation4 + $0x7] sm:$0x1] %vm1050_vm7, %v1979_v49 }
0x2e99   :  { %v1982_v50 = vld [vmem:[#allocation4] sm:$0xff] }
0x2e9a   :  { %2410 = vmatmul.mubr.msk.f32.vlgmr.msra.gmra.mrb[18].mxu1 %vm1145_vm9, %v1982_v50 }
0x2f6d   :  { %v2063_v52 = vpop.f32.mrb[18].mxu1 }
0x2f6e   :  { %v2064_v53 = vadd.f32 %v2200_v51, %v2063_v52  ;;  %v2411_v54 = vpop.f32.mrb[19].mxu1 }
0x2f70   :  { %2067 = vmax.xlane.f32.xlu0 %v2064_v53 }
0x2f86   :  { %1053 = vrot.lane.b32.xlu0 %v2955_v13, %s2693_s1 }
0x2ffd   :  { %v2068_v55 = vpop.xlane.xlu0 %2067 }
0x2ffe   :  { %v2069_v10 = vsub.f32 %v2064_v53, %v2068_v55 }
0x3000   :  { %v2070_v56 = vmul.f32 1.442695, %v2069_v10 }
0x3001   :  { %v1054_v57 = vpop.permute.xlu0 %1053 }
0x3002   :  { %2587 = vpow2.f32 %v2070_v56  ;;  %1056 = vst.msk [vmem:[#allocation9] sm:$0x1] %vm1050_vm7, %v1054_v57 }
0x300c   :  { %v2588_v58 = vpop.eup %2587 }
0x300d   :  { %2072 = vadd.xlane.f32.xlu1 %v2588_v58 }
0x300e   :  { %2602 = shalt.err (!%p2599_p4)
}
0x300f   :  { %s2603_s15 = scalar_lea.hbm %s3137_s12, 16 }
0x3010   :  { %p2604_p5 = scmp.ne.s32.totalorder %s3137_s12, %s2603_s15  ;;  %p2607_p6 = scmp.lt.u32.totalorder %s2603_s15, %s3137_s12 }
0x3012   :  { %p2609_p7 = pnand %p2607_p6, %p2604_p5 }
0x3014   :  { %2612 = shalt.err (!%p2609_p7)
}
0x3015   :  { %2096 = dma.vmem_to_hbm [thread:$0]  %s2094_s25, 16, %s3137_s12, [#allocation8]  }
0x3016   :  { %s2697_s20 = smov [#allocation9]  }
0x3017   :  { %s2103_s21 = sshll.u32 %s2697_s20, 4  ;;  %s2104_s21 = int_to_ptr.vmem [resolvable:$true] %s2103_s21 }
0x3018   :  { %s2613_s22 = scalar_lea.vmem %s2104_s21, 16  ;;  %s2617_s6 = scalar_lea.vmem %s2104_s21, 32 }
0x3019   :  { %p2614_p8 = scmp.ne.s32.totalorder %s2104_s21, %s2613_s22  ;;  %p2618_p9 = scmp.lt.s32.totalorder %s2104_s21, %s2104_s21 }
0x301a   :  { %p2619_p10 = scmp.lt.s32.totalorder %s2617_s6, %s2613_s22 }
0x301c   :  { %p2620_p11 = por %p2619_p10, %p2618_p9 }
0x301e   :  { %p2621_p12 = pnand %p2620_p11, %p2614_p8 }
0x3020   :  { %2624 = shalt.err (!%p2621_p12)
}
0x3021   :  { %s2625_s5 = scalar_lea.hbm %s3138_s13, 16 }
0x3022   :  { %p2626_p13 = scmp.ne.s32.totalorder %s3138_s13, %s2625_s5  ;;  %p2629_p0 = scmp.lt.u32.totalorder %s2625_s5, %s3138_s13 }
0x3024   :  { %p2631_p1 = pnand %p2629_p0, %p2626_p13 }
0x3026   :  { %2634 = shalt.err (!%p2631_p1)
}
0x3027   :  { %2106 = dma.vmem_to_hbm [thread:$0]  %s2104_s21, 16, %s3138_s13, [#allocation8]  }
0x3028   :  { %s2698_s28 = smov [#allocation10]  }
0x3029   :  { %s2113_s2 = sshll.u32 %s2698_s28, 4  ;;  %s2114_s2 = int_to_ptr.vmem [resolvable:$true] %s2113_s2 }
0x302a   :  { %s2635_s9 = scalar_lea.vmem %s2114_s2, 16  ;;  %s2639_s25 = scalar_lea.vmem %s2114_s2, 32 }
0x302b   :  { %p2636_p2 = scmp.ne.s32.totalorder %s2114_s2, %s2635_s9  ;;  %p2640_p3 = scmp.lt.s32.totalorder %s2114_s2, %s2114_s2 }
0x302c   :  { %p2641_p4 = scmp.lt.s32.totalorder %s2639_s25, %s2635_s9 }
0x302e   :  { %p2642_p5 = por %p2641_p4, %p2640_p3 }
0x3030   :  { %p2643_p6 = pnand %p2642_p5, %p2636_p2 }
0x3032   :  { %2646 = shalt.err (!%p2643_p6)
}
0x3033   :  { %s2647_s29 = scalar_lea.hbm %s3139_s14, 16 }
0x3034   :  { %p2648_p7 = scmp.ne.s32.totalorder %s3139_s14, %s2647_s29  ;;  %p2651_p8 = scmp.lt.u32.totalorder %s2647_s29, %s3139_s14 }
0x3036   :  { %p2653_p9 = pnand %p2651_p8, %p2648_p7 }
0x3038   :  { %2656 = shalt.err (!%p2653_p9)
}
0x3039   :  { %2116 = dma.vmem_to_hbm [thread:$0]  %s2114_s2, 16, %s3139_s14, [#allocation11]  }
0x303a   :  { %s2699_s3 = smov [#allocation5]  }
0x303b   :  { %s2083_s18 = sshll.u32 %s2699_s3, 4  ;;  %s2084_s18 = int_to_ptr.vmem [resolvable:$true] %s2083_s18 }
0x303c   :  { %s2657_s19 = scalar_lea.vmem %s2084_s18, 128  ;;  %p2662_p11 = scmp.lt.s32.totalorder %s2084_s18, %s2084_s18 }
0x303d   :  { %p2658_p10 = scmp.ne.s32.totalorder %s2084_s18, %s2657_s19  ;;  %p2663_p12 = scmp.lt.s32.totalorder %s2657_s19, %s2657_s19 }
0x303f   :  { %p2664_p13 = por %p2663_p12, %p2662_p11 }
0x3041   :  { %p2665_p0 = pnand %p2664_p13, %p2658_p10 }
0x309a   :  { %v2073_v13 = vpop.xlane.xlu1 %2072 }
0x309b   :  { %2589 = vrcp.f32 %v2073_v13 }
0x30a5   :  { %v2590_v59 = vpop.eup %2589 }
0x30a6   :  { %v2075_v60 = vmul.f32 %v2590_v59, %v2588_v58 }
0x30a8   :  { %2076 = vst [vmem:[#allocation5] sm:$0xff] %v2075_v60 }
0x30a9   :  { %2668 = shalt.err (!%p2665_p0)
}
0x30aa   :  { %s2669_s22 = scalar_lea.hbm %s3136_s11, 128 }
0x30ab   :  { %p2670_p1 = scmp.ne.s32.totalorder %s3136_s11, %s2669_s22  ;;  %p2673_p2 = scmp.lt.u32.totalorder %s2669_s22, %s3136_s11 }
0x30ad   :  { %p2675_p3 = pnand %p2673_p2, %p2670_p1 }
0x30af   :  { %2678 = shalt.err (!%p2675_p3)
}
0x30b0   :  { %2086 = dma.vmem_to_hbm [thread:$0]  %s2084_s18, 128, %s3136_s11, [#allocation6]  }
0x30b1   :  { %2679 = dma.done.wait [#allocation6], 128  }
0x30b2   :  { %2680 = vsyncadd [#allocation6], 4294967168 }
0x30b3   :  { %2681 = dma.done.wait [#allocation8], 32  }
0x30b4   :  { %2682 = vsyncadd [#allocation8], 4294967264 }
0x30b5   :  { %2683 = dma.done.wait [#allocation11], 16  }
0x30b6   :  { %2684 = vsyncadd [#allocation11], 4294967280 }
0x30b7   :  { %2129 = vsyncpa [#allocation6], 1 }
0x30b8   :  { %2130 = vsyncpa [#allocation8], 1 }
0x30b9   :  { %2131 = vsyncpa [#allocation11], 1 }

</bundles_post_ra>
